<compile_context>
chip_gen: v6e
topology: v6e:2x2x1
jax: 0.10.0
libtpu: 0.0.40
codegen_flags: <defaults>
</compile_context>

<pallas_src>
import jax
import jax.numpy as jnp
from jax.experimental import pallas as pl
from jax.experimental.pallas import tpu as pltpu


# -----------------------------------------------------------------------------
# Kernel: one batch tile through all four layers.
#   fc1 -> relu -> fc2 -> relu -> fc3 -> relu -> fc4 -> sigmoid
# Matmul operands are bf16 (native MXU dtype); accumulation, bias add and
# activations are f32.
# -----------------------------------------------------------------------------
def _mlp4_kernel(x_ref,
                 w1_ref, b1_ref,
                 w2_ref, b2_ref,
                 w3_ref, b3_ref,
                 w4_ref, b4_ref,
                 o_ref):
    x = x_ref[...].astype(jnp.bfloat16)
    # encode: fc1 -> relu -> fc2 -> relu
    h = jnp.dot(x, w1_ref[...], preferred_element_type=jnp.float32) + b1_ref[...]
    h = jnp.maximum(h, 0.0).astype(jnp.bfloat16)
    h = jnp.dot(h, w2_ref[...], preferred_element_type=jnp.float32) + b2_ref[...]
    h = jnp.maximum(h, 0.0).astype(jnp.bfloat16)
    # decode: fc3 -> relu -> fc4 -> sigmoid
    h = jnp.dot(h, w3_ref[...], preferred_element_type=jnp.float32) + b3_ref[...]
    h = jnp.maximum(h, 0.0).astype(jnp.bfloat16)
    z = jnp.dot(h, w4_ref[...], preferred_element_type=jnp.float32) + b4_ref[...]
    # sigmoid = 1 / (1 + exp(-z)); exp and the approx reciprocal both go to the
    # EUP slot (free w.r.t. the VALU/MXU slots).
    o_ref[...] = pl.reciprocal(1.0 + jnp.exp(-z), approx=True).astype(o_ref.dtype)


# -----------------------------------------------------------------------------
# One-time parameter preparation (hoisted out of the per-call hot path).
# -----------------------------------------------------------------------------
def prepare_params(params, *, lane=128):
    """Pad the bottleneck (fc2 out / fc3 in) to a full 128-lane width and cast the
    matmul weights to bf16. Padding is exact: zero bias -> ReLU -> 0 in the padded
    channels, and the matching rows of w3 are zero, so they contribute nothing.
    Call this ONCE per parameter set, not per forward step."""
    w1, b1, w2, b2, w3, b3, w4, b4 = params
    nb = w2.shape[1]
    nb_pad = max(lane, pl.cdiv(nb, lane) * lane)
    if nb_pad != nb:
        pad = nb_pad - nb
        w2 = jnp.pad(w2, ((0, 0), (0, pad)))   # extra output channels
        b2 = jnp.pad(b2, ((0, 0), (0, pad)))   # zero bias -> ReLU -> stays 0
        w3 = jnp.pad(w3, ((0, pad), (0, 0)))   # zero rows -> padded channels contribute 0
    w1, w2, w3, w4 = (w.astype(jnp.bfloat16) for w in (w1, w2, w3, w4))
    b1, b2, b3, b4 = (b.astype(jnp.float32) for b in (b1, b2, b3, b4))
    return (w1, b1, w2, b2, w3, b3, w4, b4)


def _pick_tb(B, sublane):
    """Batch tile: multiple of `sublane`, divides B exactly (no wrapper-side padding
    of x), gives >= 4 grid steps when the batch allows it (>= 2 per v7x TensorCore
    under megacore sharding), and is as large as possible under a VMEM-safe cap
    that grows with the batch size."""
    if B % sublane != 0:
        # Ragged batch: a single full-extent block needs no alignment or padding.
        # TODO(synk): for very large ragged B, split into an aligned body + tail call.
        return B
    cap = 512 if B >= 2048 else 256        # ~10-12 MiB working set at 512 << 32 MiB limit
    upper = min(cap, B)
    if B >= 4 * sublane:
        upper = min(upper, B // 4)         # ensure >= 4 grid steps
    upper = (upper // sublane) * sublane
    for tb in range(upper, sublane - 1, -sublane):
        if B % tb == 0:
            return tb
    return B                               # fallback: one full-batch tile


# -----------------------------------------------------------------------------
# Forward wrapper.
# -----------------------------------------------------------------------------
def mlp4_forward(x, prepared_params, *, out_dtype=None):
    """4-layer MLP forward as a single fused Pallas kernel, tiled over the batch.
    `prepared_params` must come from prepare_params(). Pass x in bf16 and/or set
    out_dtype=jnp.bfloat16 to halve activation HBM traffic if the surrounding model
    can supply/consume bf16 directly."""
    w1, b1, w2, b2, w3, b3, w4, b4 = prepared_params
    B, n_in = x.shape
    n2 = w1.shape[1]
    nb = w2.shape[1]
    n_out = w4.shape[1]
    out_dtype = x.dtype if out_dtype is None else out_dtype

    # Sublane requirement depends on input dtype: 8 (f32), 16 (bf16), 32 (int8/fp8).
    sublane = max(8, 32 // x.dtype.itemsize)
    tb = _pick_tb(B, sublane)
    grid = (B // tb,)

    weights_and_biases = (w1, b1, w2, b2, w3, b3, w4, b4)

    def const_spec(a):
        # Full-extent block with a constant index_map: fetched once and kept
        # resident in VMEM across all grid steps.
        return pl.BlockSpec(a.shape, lambda i: (0, 0))

    flops = 2 * B * (n_in * n2 + n2 * nb + nb * n2 + n2 * n_out)
    bytes_accessed = (x.size * x.dtype.itemsize                       # input
                      + B * n_out * jnp.dtype(out_dtype).itemsize     # output
                      + sum(a.size * a.dtype.itemsize for a in weights_and_biases))

    return pl.pallas_call(
        _mlp4_kernel,
        out_shape=jax.ShapeDtypeStruct((B, n_out), out_dtype),
        grid=grid,
        in_specs=[pl.BlockSpec((tb, n_in), lambda i: (i, 0))]
                 + [const_spec(a) for a in weights_and_biases],
        out_specs=pl.BlockSpec((tb, n_out), lambda i: (i, 0)),
        compiler_params=pltpu.CompilerParams(
            # independent batch tiles -> shard grid steps across v7x's two TensorCores
            dimension_semantics=("parallel",),
            # working set <= ~12 MiB even at tb=512; 32 MiB leaves headroom and is
            # safely below v7x's 64 MiB physical VMEM.
            vmem_limit_bytes=32 * 1024 * 1024,
        ),
        cost_estimate=pl.CostEstimate(
            flops=flops,
            transcendentals=2 * B * n_out,       # exp + approx reciprocal (sigmoid)
            bytes_accessed=bytes_accessed,
        ),
    )(x, *weights_and_biases)


# -----------------------------------------------------------------------------
# Init + pure-JAX reference (matches PyTorch nn.Linear semantics).
# -----------------------------------------------------------------------------
def init_linear(key, fan_in, fan_out, dtype=jnp.float32):
    """PyTorch nn.Linear-style init: U(-1/sqrt(fan_in), 1/sqrt(fan_in)).
    Weight returned as (fan_in, fan_out) (transposed vs PyTorch storage)."""
    kw, kb = jax.random.split(key)
    bound = 1.0 / jnp.sqrt(jnp.float32(fan_in))
    w = jax.random.uniform(kw, (fan_in, fan_out), dtype, -bound, bound)
    b = jax.random.uniform(kb, (1, fan_out), dtype, -bound, bound)
    return w, b


def reference_forward(x, params):
    w1, b1, w2, b2, w3, b3, w4, b4 = params
    h = jnp.maximum(x @ w1 + b1, 0.0)
    h = jnp.maximum(h @ w2 + b2, 0.0)
    h = jnp.maximum(h @ w3 + b3, 0.0)
    return jax.nn.sigmoid(h @ w4 + b4)


if __name__ == "__main__":
    # Feature dims are fixed by the module (784 -> 392 -> bottleneck -> 392 -> 784);
    # N_Bottleneck has no usable default in the PyTorch module, so pick 32.
    N_input, N2, N_bottleneck, N_output = 784, 392, 32, 784
    batch = 64                      # small demo batch; _pick_tb -> tb=16, grid=(4,)

    key = jax.random.PRNGKey(0)
    k_x, k1, k2, k3, k4 = jax.random.split(key, 5)

    w1, b1 = init_linear(k1, N_input, N2)
    w2, b2 = init_linear(k2, N2, N_bottleneck)
    w3, b3 = init_linear(k3, N_bottleneck, N2)
    w4, b4 = init_linear(k4, N2, N_output)
    raw_params = (w1, b1, w2, b2, w3, b3, w4, b4)

    # One-time weight prep (pad bottleneck to 128 lanes + bf16 cast), OUTSIDE the
    # per-step hot path.
    params = prepare_params(raw_params)

    x = jax.random.normal(k_x, (batch, N_input), dtype=jnp.float32)

    fwd = jax.jit(mlp4_forward)
    out = jax.block_until_ready(fwd(x, params))

    ref = reference_forward(x, raw_params)      # pure-f32 reference
    assert out.shape == (batch, N_output)
    # bf16 matmul operands + approx-reciprocal sigmoid vs f32 reference.
    err = float(jnp.max(jnp.abs(out - ref)))
    assert err < 3e-2, err

    print("KERNEL_OK")
</pallas_src>

<mosaic_0001>
module attributes {stable_mosaic.version = 11 : i64} {
  func.func @_mlp4_kernel(%arg0: i32, %arg1: memref<16x784xf32, #tpu.memory_space<vmem>>, %arg2: memref<784x392xbf16, #tpu.memory_space<vmem>>, %arg3: memref<1x392xf32, #tpu.memory_space<vmem>>, %arg4: memref<392x128xbf16, #tpu.memory_space<vmem>>, %arg5: memref<1x128xf32, #tpu.memory_space<vmem>>, %arg6: memref<128x392xbf16, #tpu.memory_space<vmem>>, %arg7: memref<1x392xf32, #tpu.memory_space<vmem>>, %arg8: memref<392x784xbf16, #tpu.memory_space<vmem>>, %arg9: memref<1x784xf32, #tpu.memory_space<vmem>>, %arg10: memref<16x784xf32, #tpu.memory_space<vmem>>) attributes {dimension_semantics = [#tpu.dimension_semantics<parallel>], iteration_bounds = array<i64: 4>, scalar_prefetch = 0 : i64, scratch_operands = 0 : i64, tpu.core_type = #tpu.core_type<tc>, window_params = [{transform_indices = @transform_0, window_bounds = array<i64: 16, 784>}, {pipeline_mode = #tpu.pipeline_mode<synchronous>, transform_indices = @transform_1, window_bounds = array<i64: 784, 392>}, {pipeline_mode = #tpu.pipeline_mode<synchronous>, transform_indices = @transform_2, window_bounds = array<i64: 1, 392>}, {pipeline_mode = #tpu.pipeline_mode<synchronous>, transform_indices = @transform_3, window_bounds = array<i64: 392, 128>}, {pipeline_mode = #tpu.pipeline_mode<synchronous>, transform_indices = @transform_4, window_bounds = array<i64: 1, 128>}, {pipeline_mode = #tpu.pipeline_mode<synchronous>, transform_indices = @transform_5, window_bounds = array<i64: 128, 392>}, {pipeline_mode = #tpu.pipeline_mode<synchronous>, transform_indices = @transform_6, window_bounds = array<i64: 1, 392>}, {pipeline_mode = #tpu.pipeline_mode<synchronous>, transform_indices = @transform_7, window_bounds = array<i64: 392, 784>}, {pipeline_mode = #tpu.pipeline_mode<synchronous>, transform_indices = @transform_8, window_bounds = array<i64: 1, 784>}, {transform_indices = @transform_9, window_bounds = array<i64: 16, 784>}]} {
    %c0 = arith.constant 0 : index
    %c0_0 = arith.constant 0 : index
    %0 = vector.load %arg1[%c0, %c0_0] : memref<16x784xf32, #tpu.memory_space<vmem>>, vector<16x784xf32>
    %1 = arith.truncf %0 : vector<16x784xf32> to vector<16x784xbf16>
    %c0_1 = arith.constant 0 : index
    %c0_2 = arith.constant 0 : index
    %2 = vector.load %arg2[%c0_1, %c0_2] : memref<784x392xbf16, #tpu.memory_space<vmem>>, vector<784x392xbf16>
    %cst = arith.constant dense<0.000000e+00> : vector<16x392xf32>
    %3 = tpu.matmul %1, %2, %cst {dimension_numbers = #tpu.dot_dimension_numbers<[1], [0], [0], [1], [0, 0, 1, 1], [], []>} : vector<16x784xbf16>, vector<784x392xbf16>, vector<16x392xf32> -> vector<16x392xf32>
    %c0_3 = arith.constant 0 : index
    %c0_4 = arith.constant 0 : index
    %4 = vector.load %arg3[%c0_3, %c0_4] : memref<1x392xf32, #tpu.memory_space<vmem>>, vector<1x392xf32>
    %5 = vector.broadcast %4 : vector<1x392xf32> to vector<16x392xf32>
    %6 = arith.addf %3, %5 : vector<16x392xf32>
    %cst_5 = arith.constant 0.000000e+00 : f32
    %7 = vector.broadcast %cst_5 : f32 to vector<16x392xf32>
    %8 = arith.maximumf %6, %7 : vector<16x392xf32>
    %9 = arith.truncf %8 : vector<16x392xf32> to vector<16x392xbf16>
    %c0_6 = arith.constant 0 : index
    %c0_7 = arith.constant 0 : index
    %10 = vector.load %arg4[%c0_6, %c0_7] : memref<392x128xbf16, #tpu.memory_space<vmem>>, vector<392x128xbf16>
    %cst_8 = arith.constant dense<0.000000e+00> : vector<16x128xf32>
    %11 = tpu.matmul %9, %10, %cst_8 {dimension_numbers = #tpu.dot_dimension_numbers<[1], [0], [0], [1], [0, 0, 1, 1], [], []>} : vector<16x392xbf16>, vector<392x128xbf16>, vector<16x128xf32> -> vector<16x128xf32>
    %c0_9 = arith.constant 0 : index
    %c0_10 = arith.constant 0 : index
    %12 = vector.load %arg5[%c0_9, %c0_10] : memref<1x128xf32, #tpu.memory_space<vmem>>, vector<1x128xf32>
    %13 = vector.broadcast %12 : vector<1x128xf32> to vector<16x128xf32>
    %14 = arith.addf %11, %13 : vector<16x128xf32>
    %cst_11 = arith.constant 0.000000e+00 : f32
    %15 = vector.broadcast %cst_11 : f32 to vector<16x128xf32>
    %16 = arith.maximumf %14, %15 : vector<16x128xf32>
    %17 = arith.truncf %16 : vector<16x128xf32> to vector<16x128xbf16>
    %c0_12 = arith.constant 0 : index
    %c0_13 = arith.constant 0 : index
    %18 = vector.load %arg6[%c0_12, %c0_13] : memref<128x392xbf16, #tpu.memory_space<vmem>>, vector<128x392xbf16>
    %cst_14 = arith.constant dense<0.000000e+00> : vector<16x392xf32>
    %19 = tpu.matmul %17, %18, %cst_14 {dimension_numbers = #tpu.dot_dimension_numbers<[1], [0], [0], [1], [0, 0, 1, 1], [], []>} : vector<16x128xbf16>, vector<128x392xbf16>, vector<16x392xf32> -> vector<16x392xf32>
    %c0_15 = arith.constant 0 : index
    %c0_16 = arith.constant 0 : index
    %20 = vector.load %arg7[%c0_15, %c0_16] : memref<1x392xf32, #tpu.memory_space<vmem>>, vector<1x392xf32>
    %21 = vector.broadcast %20 : vector<1x392xf32> to vector<16x392xf32>
    %22 = arith.addf %19, %21 : vector<16x392xf32>
    %cst_17 = arith.constant 0.000000e+00 : f32
    %23 = vector.broadcast %cst_17 : f32 to vector<16x392xf32>
    %24 = arith.maximumf %22, %23 : vector<16x392xf32>
    %25 = arith.truncf %24 : vector<16x392xf32> to vector<16x392xbf16>
    %c0_18 = arith.constant 0 : index
    %c0_19 = arith.constant 0 : index
    %26 = vector.load %arg8[%c0_18, %c0_19] : memref<392x784xbf16, #tpu.memory_space<vmem>>, vector<392x784xbf16>
    %cst_20 = arith.constant dense<0.000000e+00> : vector<16x784xf32>
    %27 = tpu.matmul %25, %26, %cst_20 {dimension_numbers = #tpu.dot_dimension_numbers<[1], [0], [0], [1], [0, 0, 1, 1], [], []>} : vector<16x392xbf16>, vector<392x784xbf16>, vector<16x784xf32> -> vector<16x784xf32>
    %c0_21 = arith.constant 0 : index
    %c0_22 = arith.constant 0 : index
    %28 = vector.load %arg9[%c0_21, %c0_22] : memref<1x784xf32, #tpu.memory_space<vmem>>, vector<1x784xf32>
    %29 = vector.broadcast %28 : vector<1x784xf32> to vector<16x784xf32>
    %30 = arith.addf %27, %29 : vector<16x784xf32>
    %cst_23 = arith.constant 0.000000e+00 : f32
    %31 = vector.broadcast %cst_23 : f32 to vector<16x784xf32>
    %32 = arith.subf %31, %30 : vector<16x784xf32>
    %33 = math.exp %32 : vector<16x784xf32>
    %cst_24 = arith.constant 1.000000e+00 : f32
    %34 = vector.broadcast %cst_24 : f32 to vector<16x784xf32>
    %35 = arith.addf %34, %33 : vector<16x784xf32>
    %36 = tpu.reciprocal %35 {approx = true} : vector<16x784xf32> -> vector<16x784xf32>
    %c0_25 = arith.constant 0 : index
    %c0_26 = arith.constant 0 : index
    %37 = vector.load %arg10[%c0_25, %c0_26] : memref<16x784xf32, #tpu.memory_space<vmem>>, vector<16x784xf32>
    tpu.vector_store %arg10[%c0_25, %c0_26], %36 {strides = array<i32>} : memref<16x784xf32, #tpu.memory_space<vmem>>, vector<16x784xf32>,
    return
  }
  func.func @transform_0(%arg0: i32) -> (i32, i32) {
    %c0_i32 = arith.constant 0 : i32
    %c0_i32_0 = arith.constant 0 : i32
    return %arg0, %c0_i32 : i32, i32
  }
  func.func @transform_1(%arg0: i32) -> (i32, i32) {
    %c0_i32 = arith.constant 0 : i32
    %c0_i32_0 = arith.constant 0 : i32
    %c0_i32_1 = arith.constant 0 : i32
    return %c0_i32, %c0_i32_0 : i32, i32
  }
  func.func @transform_2(%arg0: i32) -> (i32, i32) {
    %c0_i32 = arith.constant 0 : i32
    %c0_i32_0 = arith.constant 0 : i32
    %c0_i32_1 = arith.constant 0 : i32
    return %c0_i32, %c0_i32_0 : i32, i32
  }
  func.func @transform_3(%arg0: i32) -> (i32, i32) {
    %c0_i32 = arith.constant 0 : i32
    %c0_i32_0 = arith.constant 0 : i32
    %c0_i32_1 = arith.constant 0 : i32
    return %c0_i32, %c0_i32_0 : i32, i32
  }
  func.func @transform_4(%arg0: i32) -> (i32, i32) {
    %c0_i32 = arith.constant 0 : i32
    %c0_i32_0 = arith.constant 0 : i32
    %c0_i32_1 = arith.constant 0 : i32
    return %c0_i32, %c0_i32_0 : i32, i32
  }
  func.func @transform_5(%arg0: i32) -> (i32, i32) {
    %c0_i32 = arith.constant 0 : i32
    %c0_i32_0 = arith.constant 0 : i32
    %c0_i32_1 = arith.constant 0 : i32
    return %c0_i32, %c0_i32_0 : i32, i32
  }
  func.func @transform_6(%arg0: i32) -> (i32, i32) {
    %c0_i32 = arith.constant 0 : i32
    %c0_i32_0 = arith.constant 0 : i32
    %c0_i32_1 = arith.constant 0 : i32
    return %c0_i32, %c0_i32_0 : i32, i32
  }
  func.func @transform_7(%arg0: i32) -> (i32, i32) {
    %c0_i32 = arith.constant 0 : i32
    %c0_i32_0 = arith.constant 0 : i32
    %c0_i32_1 = arith.constant 0 : i32
    return %c0_i32, %c0_i32_0 : i32, i32
  }
  func.func @transform_8(%arg0: i32) -> (i32, i32) {
    %c0_i32 = arith.constant 0 : i32
    %c0_i32_0 = arith.constant 0 : i32
    %c0_i32_1 = arith.constant 0 : i32
    return %c0_i32, %c0_i32_0 : i32, i32
  }
  func.func @transform_9(%arg0: i32) -> (i32, i32) {
    %c0_i32 = arith.constant 0 : i32
    %c0_i32_0 = arith.constant 0 : i32
    return %arg0, %c0_i32 : i32, i32
  }
}

</mosaic_0001>

<bundles_post_ra>
// kernel: mlp4_forward.1
= control target key start
LH: loop header
LB: loop body
LE: loop exit
PB: predicated region body
PF: predicated region fallthrough
CT: control target
= control target key end

     0   :  { %14 = vsyncpa [#allocation3], 0  ;;  %s7044_s0 = inlined_call_operand.vmem [shape: f32[64,784], index: 0, kind: input, shape index: {}]   ;;  %s7045_s1 = inlined_call_operand.vmem [shape: bf16[784,392], index: 1, kind: input, shape index: {}]   ;;  %s7046_s2 = inlined_call_operand.vmem [shape: f32[1,392], index: 2, kind: input, shape index: {}]   ;;  %s7047_s3 = inlined_call_operand.vmem [shape: bf16[392,128], index: 3, kind: input, shape index: {}]   ;;  %s7048_s4 = inlined_call_operand.vmem [shape: f32[1,128], index: 4, kind: input, shape index: {}]   ;;  %s7049_s5 = inlined_call_operand.vmem [shape: bf16[128,392], index: 5, kind: input, shape index: {}]   ;;  %s7050_s6 = inlined_call_operand.vmem [shape: f32[1,392], index: 6, kind: input, shape index: {}]   ;;  %s7051_s7 = inlined_call_operand.vmem [shape: bf16[392,784], index: 7, kind: input, shape index: {}]   ;;  %s7052_s8 = inlined_call_operand.vmem [shape: f32[1,784], index: 8, kind: input, shape index: {}]   ;;  %s7053_s9 = inlined_call_operand.hbm [shape: f32[64,784], index: 9, kind: output, shape index: {}]  }
   0x1   :  { %16 = vsyncpa [#allocation3 + $0x1], 0  ;;  %s5490_s30 = smov 0   ;;  %s5492_s10 = smov 0  }
   0x2   :  { %s5494_s11 = smov 0   ;;  %s5496_s12 = smov 0  }
   0x3 LB: > { %s5511_s13 = sadd.s32 4294967295, %s5434_s12   ;;  %s4165_s14 = sadd.s32 4294967294, %s5434_s12   ;;  %s5434_s12 = sphi %s5496_s12, %s7059_s12   ;;  %s5430_s11 = sphi %s5494_s11, %s7058_s11   ;;  %s5426_s10 = sphi %s5492_s10, %s7057_s10   ;;  %s5422_s30 = sphi %s5490_s30, %s7056_s30  }
   0x4   : > { %s5515_s15 = sadd.s32 1, %s5434_s12   ;;  %s223_s16 = sadd.s32 1, %s5430_s11 }
   0x5   : > { %s220_s17 = ssub.s32 %s5434_s12, %s5515_s15  ;;  %p233_p0 = scmp.ne.s32.totalorder %s5430_s11, %s5426_s10 }
   0x6   : > { %p221_p1 = scmp.eq.s32.totalorder %s220_s17, 0  ;;  %p234_p2 = scmp.eq.s32.totalorder %s5511_s13, 3 }
   0x7   : > { %p239_p3 = scmp.ne.s32.totalorder %s5426_s10, %s5422_s30  ;;  %p240_p4 = scmp.eq.s32.totalorder %s4165_s14, 3 }
   0x8   : > { %s5526_s18 = scalar_select %p221_p1, %s5430_s11, %s223_s16  }
   0x9   : > { %p5528_p5 = por %p234_p2, %p233_p0  ;;  %p5532_p6 = por %p240_p4, %p239_p3 }
   0xa   : > { %p4168_p7 = scmp.ge.s32.totalorder %s5434_s12, 1  ;;  %p292_p8 = scmp.lt.s32.totalorder %s5434_s12, 5 }
   0xc   : > { %p293_p9 = pnand %p4168_p7, %p292_p8 }
   0xd   : > { %s4169_s16 = sshll.u32 (!%p293_p9), %s5511_s13, 1  ;;  %s326_s25 = sand.u32 (!%p293_p9), 1, %s5426_s10  }
   0xe   : > { %296 = sbr.rel (%p293_p9) target bundleno = 1229 (0x4cd), region = 56  ;;  %p330_p10 = scmp.lt.s32.totalorder (!%p293_p9), %s4169_s16, 7 }
   0xf   : > { %s7004_s22 = scalar_lea.sflag (!%p293_p9), [#allocation3], %s326_s25  ;;  %s5437_s23 = smov (!%p293_p9), [#allocation2]  }
  0x10   : > { %s5378_s24 = sshll.u32 (!%p293_p9), %s5437_s23, 4  ;;  %s5379_s24 = int_to_ptr.vmem [resolvable:$false] %s5378_s24 }
  0x13   : > { %v4704_v0 = vld [vmem:[%s7045_s1 + $0xe4] ss:$16 sps:$4 sm:$0xff]   ;;  %v4708_v2 = vld [vmem:[%s7045_s1 + $0xe0] ss:$16 sps:$4 sm:$0xff]   ;;  %s7061_s16 = smov (!%p330_p10, %s4169_s16), 7  ;;  %vm1557_vm0 = vcmask 130048  }
  0x14   : > { %v4706_v1 = vld [vmem:[%s7045_s1 + $0x2e4] ss:$16 sps:$4 sm:$0xff]   ;;  %1561 = vmatprep.subr.bf16.mxu0 %v4704_v0  ;;  %v4709_v3 = vld [vmem:[%s7045_s1 + $0x2e0] ss:$16 sps:$4 sm:$0xff]   ;;  %s4660_s29 = smul.u32 56, %s7061_s16  ;;  %vm2124_vm1 = vcmask 1043456  }
  0x15   : > { %1604 = vmatprep.subr.bf16.mxu1 %v4706_v1  ;;  %v4710_v4 = vld [vmem:[%s7045_s1 + $0xc4] ss:$16 sps:$4 sm:$0xff]   ;;  %1562 = vmatpush1.bf16.msra.mxu0 %v4708_v2  ;;  %v4714_v6 = vld [vmem:[%s7045_s1 + $0xc0] ss:$16 sps:$4 sm:$0xff]   ;;  %vm2120_vm2 = vcmask 64512   ;;  %s4661_s16 = smul.u32 1792, %s5511_s13 }
  0x16   : > { %1605 = vmatpush1.bf16.msra.mxu1 %v4709_v3  ;;  %v4712_v5 = vld [vmem:[%s7045_s1 + $0x2c4] ss:$16 sps:$4 sm:$0xff]   ;;  %1563 = vmatprep.subr.bf16.mxu0 %v4710_v4  ;;  %v4715_v7 = vld [vmem:[%s7045_s1 + $0x2c0] ss:$16 sps:$4 sm:$0xff]   ;;  %s5674_s17 = scalar_lea.vmem %s7044_s0, %s4660_s29  ;;  %s5380_s29 = scalar_lea.vmem %s5379_s24, 3584 }
  0x17   : > { %1606 = vmatprep.subr.bf16.mxu1 %v4712_v5  ;;  %v4716_v8 = vld [vmem:[%s7045_s1 + $0xa4] ss:$16 sps:$4 sm:$0xff]   ;;  %v4720_v10 = vld [vmem:[%s7045_s1 + $0xa0] ss:$16 sps:$4 sm:$0xff]   ;;  %v339_v46 = vld [vmem:[%s5674_s17 + $0x8] sm:$0xff]  ;;  %s6996_s21 = scalar_lea.hbm %s7053_s9, %s4661_s16 }
  0x18   : > { %v4718_v9 = vld [vmem:[%s7045_s1 + $0x2a4] ss:$16 sps:$4 sm:$0xff]   ;;  %v4721_v11 = vld [vmem:[%s7045_s1 + $0x2a0] ss:$16 sps:$4 sm:$0xff]   ;;  %v341_v48 = vld [vmem:[%s5674_s17 + $0x18] sm:$0xff] }
  0x19   : > { %1564 = vmatpush1.bf16.msra.mxu0 %v4714_v6  ;;  %v4722_v12 = vld [vmem:[%s7045_s1 + $0x84] ss:$16 sps:$4 sm:$0xff]   ;;  %v4726_v14 = vld [vmem:[%s7045_s1 + $0x80] ss:$16 sps:$4 sm:$0xff]  }
  0x1a   : > { %1607 = vmatpush1.bf16.msra.mxu1 %v4715_v7  ;;  %1565 = vmatprep.subr.bf16.mxu0 %v4716_v8  ;;  %v4724_v13 = vld [vmem:[%s7045_s1 + $0x284] ss:$16 sps:$4 sm:$0xff]   ;;  %v4727_v15 = vld [vmem:[%s7045_s1 + $0x280] ss:$16 sps:$4 sm:$0xff]   ;;  %v345_v7 = vld [vmem:[%s5674_s17 + $0x38] sm:$0xff] }
  0x1b   : > { %1608 = vmatprep.subr.bf16.mxu1 %v4718_v9  ;;  %v4728_v16 = vld [vmem:[%s7045_s1 + $0x64] ss:$16 sps:$4 sm:$0xff]   ;;  %v4732_v18 = vld [vmem:[%s7045_s1 + $0x60] ss:$16 sps:$4 sm:$0xff]   ;;  %v347_v9 = vld [vmem:[%s5674_s17 + $0x48] sm:$0xff] }
  0x1c   : > { %v4730_v17 = vld [vmem:[%s7045_s1 + $0x264] ss:$16 sps:$4 sm:$0xff]   ;;  %v4733_v19 = vld [vmem:[%s7045_s1 + $0x260] ss:$16 sps:$4 sm:$0xff]  }
  0x1d   : > { %1566 = vmatpush1.bf16.msra.mxu0 %v4720_v10  ;;  %v4734_v20 = vld [vmem:[%s7045_s1 + $0x44] ss:$16 sps:$4 sm:$0xff]   ;;  %v4738_v22 = vld [vmem:[%s7045_s1 + $0x40] ss:$16 sps:$4 sm:$0xff]  }
  0x1e   : > { %1609 = vmatpush1.bf16.msra.mxu1 %v4721_v11  ;;  %1567 = vmatprep.subr.bf16.mxu0 %v4722_v12  ;;  %v4736_v21 = vld [vmem:[%s7045_s1 + $0x244] ss:$16 sps:$4 sm:$0xff]   ;;  %v4739_v23 = vld [vmem:[%s7045_s1 + $0x240] ss:$16 sps:$4 sm:$0xff]  }
  0x1f   : > { %1610 = vmatprep.subr.bf16.mxu1 %v4724_v13  ;;  %v4740_v24 = vld [vmem:[%s7045_s1 + $0x24] ss:$16 sps:$4 sm:$0xff]   ;;  %v4744_v26 = vld [vmem:[%s7045_s1 + $0x20] ss:$16 sps:$4 sm:$0xff]  }
  0x20   : > { %v4742_v25 = vld [vmem:[%s7045_s1 + $0x224] ss:$16 sps:$4 sm:$0xff]   ;;  %v4745_v27 = vld [vmem:[%s7045_s1 + $0x220] ss:$16 sps:$4 sm:$0xff]  }
  0x21   : > { %1568 = vmatpush1.bf16.msra.mxu0 %v4726_v14  ;;  %v4746_v28 = vld [vmem:[%s7045_s1 + $0x4] ss:$16 sps:$4 sm:$0xff]   ;;  %v4750_v30 = vld [vmem:[%s7045_s1] ss:$16 sps:$4 sm:$0xff]  }
  0x22   : > { %1611 = vmatpush1.bf16.msra.mxu1 %v4727_v15  ;;  %1569 = vmatprep.subr.bf16.mxu0 %v4728_v16  ;;  %v4748_v29 = vld [vmem:[%s7045_s1 + $0x204] ss:$16 sps:$4 sm:$0xff]   ;;  %v4751_v31 = vld [vmem:[%s7045_s1 + $0x200] ss:$16 sps:$4 sm:$0xff]  }
  0x23   : > { %1612 = vmatprep.subr.bf16.mxu1 %v4730_v17  ;;  %v4752_v32 = vld [vmem:[%s7045_s1 + $0x1e4] ss:$16 sps:$4 sm:$0xff]   ;;  %v4756_v34 = vld [vmem:[%s7045_s1 + $0x1e0] ss:$16 sps:$4 sm:$0xff]   ;;  %v4811_v17 = vld [vmem:[%s7045_s1 + $0xec] ss:$16 sps:$4 sm:$0xff]  }
  0x24   : > { %v4754_v33 = vld [vmem:[%s7045_s1 + $0x3e4] ss:$16 sps:$4 sm:$0xff]   ;;  %v4757_v35 = vld [vmem:[%s7045_s1 + $0x3e0] ss:$16 sps:$4 sm:$0xff]  }
  0x25   : > { %1570 = vmatpush1.bf16.msra.mxu0 %v4732_v18  ;;  %v4758_v36 = vld [vmem:[%s7045_s1 + $0x1c4] ss:$16 sps:$4 sm:$0xff]   ;;  %v4762_v38 = vld [vmem:[%s7045_s1 + $0x1c0] ss:$16 sps:$4 sm:$0xff]  }
  0x26   : > { %1613 = vmatpush1.bf16.msra.mxu1 %v4733_v19  ;;  %1571 = vmatprep.subr.bf16.mxu0 %v4734_v20  ;;  %v4760_v37 = vld [vmem:[%s7045_s1 + $0x3c4] ss:$16 sps:$4 sm:$0xff]   ;;  %v4763_v39 = vld [vmem:[%s7045_s1 + $0x3c0] ss:$16 sps:$4 sm:$0xff]   ;;  %v351_v20 = vld [vmem:[%s5674_s17 + $0x68] sm:$0xff] }
  0x27   : > { %1614 = vmatprep.subr.bf16.mxu1 %v4736_v21  ;;  %v4764_v40 = vld [vmem:[%s7045_s1 + $0x1a4] ss:$16 sps:$4 sm:$0xff]   ;;  %v4768_v42 = vld [vmem:[%s7045_s1 + $0x1a0] ss:$16 sps:$4 sm:$0xff]   ;;  %v5436_v21 = vmov 0  }
  0x28   : > { %v4766_v41 = vld [vmem:[%s7045_s1 + $0x3a4] ss:$16 sps:$4 sm:$0xff]   ;;  %v4769_v43 = vld [vmem:[%s7045_s1 + $0x3a0] ss:$16 sps:$4 sm:$0xff]  }
  0x29   : > { %1572 = vmatpush1.bf16.msra.mxu0 %v4738_v22  ;;  %v4770_v44 = vld [vmem:[%s7045_s1 + $0x184] ss:$16 sps:$4 sm:$0xff]   ;;  %v4774_v50 = vld [vmem:[%s7045_s1 + $0x180] ss:$16 sps:$4 sm:$0xff]  }
  0x2a   : > { %1615 = vmatpush1.bf16.msra.mxu1 %v4739_v23  ;;  %1573 = vmatprep.subr.bf16.mxu0 %v4740_v24  ;;  %v4772_v45 = vld [vmem:[%s7045_s1 + $0x384] ss:$16 sps:$4 sm:$0xff]   ;;  %v4775_v51 = vld [vmem:[%s7045_s1 + $0x380] ss:$16 sps:$4 sm:$0xff]   ;;  %v4809_v24 = vld [vmem:[%s7045_s1 + $0xe8] ss:$16 sps:$4 sm:$0xff]  }
  0x2b   : > { %1616 = vmatprep.subr.bf16.mxu1 %v4742_v25  ;;  %v346_v47 = vld [vmem:[%s5674_s17 + $0x40] sm:$0xff]  ;;  %v348_v49 = vld [vmem:[%s5674_s17 + $0x50] sm:$0xff] }
  0x2c   : > { %v4776_v52 = vld [vmem:[%s7045_s1 + $0x164] ss:$16 sps:$4 sm:$0xff]   ;;  %v5695_v53 = vpack.c.bf16 %v346_v47, %v339_v46  ;;  %v5697_v54 = vpack.c.bf16 %v348_v49, %v341_v48  ;;  %v4780_v56 = vld [vmem:[%s7045_s1 + $0x160] ss:$16 sps:$4 sm:$0xff]   ;;  %v4839_v47 = vld [vmem:[%s7045_s1 + $0x48] ss:$16 sps:$4 sm:$0xff]  }
  0x2d   : > { %1574 = vmatpush1.bf16.msra.mxu0 %v4744_v26  ;;  %v4778_v55 = vld [vmem:[%s7045_s1 + $0x364] ss:$16 sps:$4 sm:$0xff]   ;;  %v4781_v57 = vld [vmem:[%s7045_s1 + $0x360] ss:$16 sps:$4 sm:$0xff]   ;;  %v4817_v26 = vld [vmem:[%s7045_s1 + $0xcc] ss:$16 sps:$4 sm:$0xff]  }
  0x2e   : > { %1617 = vmatpush1.bf16.msra.mxu1 %v4745_v27  ;;  %1575 = vmatprep.subr.bf16.mxu0 %v4746_v28  ;;  %v4782_v58 = vld [vmem:[%s7045_s1 + $0x144] ss:$16 sps:$4 sm:$0xff]   ;;  %v4786_v60 = vld [vmem:[%s7045_s1 + $0x140] ss:$16 sps:$4 sm:$0xff]   ;;  %v4815_v28 = vld [vmem:[%s7045_s1 + $0xc8] ss:$16 sps:$4 sm:$0xff]  }
  0x2f   : > { %1618 = vmatprep.subr.bf16.mxu1 %v4748_v29  ;;  %1593 = vmatprep.mubr.bf16.mxu0 %v5695_v53  ;;  %v4784_v59 = vld [vmem:[%s7045_s1 + $0x344] ss:$16 sps:$4 sm:$0xff]   ;;  %v4787_v61 = vld [vmem:[%s7045_s1 + $0x340] ss:$16 sps:$4 sm:$0xff]   ;;  %v4847_v49 = vld [vmem:[%s7045_s1 + $0x2c] ss:$16 sps:$4 sm:$0xff]  }
  0x30   : > { %1636 = vmatprep.mubr.bf16.mxu1 %v5697_v54  ;;  %v4788_v62 = vld [vmem:[%s7045_s1 + $0x124] ss:$16 sps:$4 sm:$0xff]   ;;  %v4792_v0 = vld [vmem:[%s7045_s1 + $0x120] ss:$16 sps:$4 sm:$0xff]  }
  0x31   : > { %1576 = vmatpush1.bf16.msra.mxu0 %v4750_v30  ;;  %v4790_v63 = vld [vmem:[%s7045_s1 + $0x324] ss:$16 sps:$4 sm:$0xff]   ;;  %v4793_v1 = vld [vmem:[%s7045_s1 + $0x320] ss:$16 sps:$4 sm:$0xff]   ;;  %v4823_v30 = vld [vmem:[%s7045_s1 + $0xac] ss:$16 sps:$4 sm:$0xff]  }
  0x32   : > { %1619 = vmatpush1.bf16.msra.mxu1 %v4751_v31  ;;  %1577 = vmatprep.subr.bf16.mxu0 %v4752_v32  ;;  %v4794_v2 = vld [vmem:[%s7045_s1 + $0x104] ss:$16 sps:$4 sm:$0xff]   ;;  %v4798_v4 = vld [vmem:[%s7045_s1 + $0x100] ss:$16 sps:$4 sm:$0xff]   ;;  %v4821_v32 = vld [vmem:[%s7045_s1 + $0xa8] ss:$16 sps:$4 sm:$0xff]  }
  0x33   : > { %1620 = vmatprep.subr.bf16.mxu1 %v4754_v33  ;;  %v4796_v3 = vld [vmem:[%s7045_s1 + $0x304] ss:$16 sps:$4 sm:$0xff]   ;;  %v4799_v5 = vld [vmem:[%s7045_s1 + $0x300] ss:$16 sps:$4 sm:$0xff]  }
  0x34   : > { %v338_v6 = vld [vmem:[%s5674_s17] sm:$0xff]  ;;  %v340_v8 = vld [vmem:[%s5674_s17 + $0x10] sm:$0xff] }
  0x35   : > { %1578 = vmatpush2.bf16.msra.mxu0 %v4756_v34  ;;  %v4802_v10 = vld [vmem:[%s7045_s1 + $0x4e4] ss:$16 sps:$4 sm:$0xff]   ;;  %v5756_v12 = vpack.c.bf16 %v345_v7, %v338_v6  ;;  %v5758_v13 = vpack.c.bf16 %v347_v9, %v340_v8  ;;  %v4800_v14 = vld [vmem:[%s7045_s1 + $0x4e0] ss:$16 sps:$4 sm:$0xff]   ;;  %v4829_v34 = vld [vmem:[%s7045_s1 + $0x8c] ss:$16 sps:$4 sm:$0xff]  }
  0x36   : > { %1621 = vmatpush2.bf16.msra.mxu1 %v4757_v35  ;;  %1579 = vmatprep.subr.bf16.mxu0 %v4758_v36  ;;  %v4805_v11 = vld [vmem:[%s7045_s1 + $0x604] ss:$16 sps:$4 sm:$0xff]   ;;  %v4803_v15 = vld [vmem:[%s7045_s1 + $0x600] ss:$16 sps:$4 sm:$0xff]   ;;  %v4827_v36 = vld [vmem:[%s7045_s1 + $0x88] ss:$16 sps:$4 sm:$0xff]  }
  0x37   : > { %1622 = vmatprep.subr.bf16.mxu1 %v4760_v37  ;;  %v4808_v16 = vld [vmem:[%s7045_s1 + $0x4c4] ss:$16 sps:$4 sm:$0xff]   ;;  %v4806_v18 = vld [vmem:[%s7045_s1 + $0x4c0] ss:$16 sps:$4 sm:$0xff]   ;;  %v4877_v6 = vld [vmem:[%s7045_s1 + $0x18c] ss:$16 sps:$4 sm:$0xff]  }
  0x38   : > { %v344_v19 = vld [vmem:[%s5674_s17 + $0x30] sm:$0xff]  ;;  %v4875_v8 = vld [vmem:[%s7045_s1 + $0x188] ss:$16 sps:$4 sm:$0xff]  }
  0x39   : > { %1580 = vmatpush2.bf16.msra.mxu0 %v4762_v38  ;;  %v4814_v22 = vld [vmem:[%s7045_s1 + $0x4a4] ss:$16 sps:$4 sm:$0xff]   ;;  %v5783_v23 = vpack.c.bf16 %v351_v20, %v344_v19  ;;  %v4812_v25 = vld [vmem:[%s7045_s1 + $0x4a0] ss:$16 sps:$4 sm:$0xff]   ;;  %v4835_v38 = vld [vmem:[%s7045_s1 + $0x6c] ss:$16 sps:$4 sm:$0xff]  }
  0x3a   : > { %1623 = vmatpush2.bf16.msra.mxu1 %v4763_v39  ;;  %1581 = vmatprep.subr.bf16.mxu0 %v4764_v40  ;;  %v4820_v27 = vld [vmem:[%s7045_s1 + $0x484] ss:$16 sps:$4 sm:$0xff]   ;;  %v4818_v29 = vld [vmem:[%s7045_s1 + $0x480] ss:$16 sps:$4 sm:$0xff]   ;;  %v4833_v40 = vld [vmem:[%s7045_s1 + $0x68] ss:$16 sps:$4 sm:$0xff]  }
  0x3b   : > { %1624 = vmatprep.subr.bf16.mxu1 %v4766_v41  ;;  %v4826_v31 = vld [vmem:[%s7045_s1 + $0x464] ss:$16 sps:$4 sm:$0xff]   ;;  %v4824_v33 = vld [vmem:[%s7045_s1 + $0x460] ss:$16 sps:$4 sm:$0xff]   ;;  %v343_v41 = vld [vmem:[%s5674_s17 + $0x28] sm:$0xff] }
  0x3c   : > { %v4832_v35 = vld [vmem:[%s7045_s1 + $0x444] ss:$16 sps:$4 sm:$0xff]   ;;  %v4830_v37 = vld [vmem:[%s7045_s1 + $0x440] ss:$16 sps:$4 sm:$0xff]  }
  0x3d   : > { %1582 = vmatpush2.bf16.msra.mxu0 %v4768_v42  ;;  %v4838_v39 = vld [vmem:[%s7045_s1 + $0x424] ss:$16 sps:$4 sm:$0xff]   ;;  %v4842_v48 = vld [vmem:[%s7045_s1 + $0x400] ss:$16 sps:$4 sm:$0xff]  }
  0x3e   : > { %1625 = vmatpush2.bf16.msra.mxu1 %v4769_v43  ;;  %1583 = vmatprep.subr.bf16.mxu0 %v4770_v44  ;;  %v350_v42 = vld [vmem:[%s5674_s17 + $0x60] sm:$0xff] }
  0x3f   : > { %1626 = vmatprep.subr.bf16.mxu1 %v4772_v45  ;;  %v4836_v43 = vld [vmem:[%s7045_s1 + $0x420] ss:$16 sps:$4 sm:$0xff]   ;;  %v5844_v44 = vpack.c.bf16 %v350_v42, %v343_v41  ;;  %v4841_v45 = vld [vmem:[%s7045_s1 + $0x4c] ss:$16 sps:$4 sm:$0xff]   ;;  %v4844_v46 = vld [vmem:[%s7045_s1 + $0x404] ss:$16 sps:$4 sm:$0xff]  }
  0x40   : > { %v4880_v7 = vld [vmem:[%s7045_s1 + $0x544] ss:$16 sps:$4 sm:$0xff]   ;;  %v4878_v9 = vld [vmem:[%s7045_s1 + $0x540] ss:$16 sps:$4 sm:$0xff]   ;;  %v4922_v41 = vld [vmem:[%s7045_s1 + $0x26c] ss:$16 sps:$4 sm:$0xff]  }
  0x41   : > { %1584 = vmatpush2.bf16.msra.mxu0 %v4774_v50  ;;  %v4850_v50 = vld [vmem:[%s7045_s1 + $0x5e4] ss:$16 sps:$4 sm:$0xff]   ;;  %v4890_v19 = vld [vmem:[%s7045_s1 + $0x500] ss:$16 sps:$4 sm:$0xff]   ;;  %v4917_v42 = vld [vmem:[%s7045_s1 + $0x4a8] ss:$16 sps:$4 sm:$0xff]  }
  0x42   : > { %1627 = vmatpush2.bf16.msra.mxu1 %v4775_v51  ;;  %1585 = vmatprep.subr.bf16.mxu0 %v4776_v52  ;;  %v4845_v51 = vld [vmem:[%s7045_s1 + $0x28] ss:$16 sps:$4 sm:$0xff]   ;;  %v4848_v52 = vld [vmem:[%s7045_s1 + $0x5e0] ss:$16 sps:$4 sm:$0xff]  }
  0x43   : > { %1628 = vmatprep.subr.bf16.mxu1 %v4778_v55  ;;  %v4856_v55 = vld [vmem:[%s7045_s1 + $0x5c4] ss:$16 sps:$4 sm:$0xff]  }
  0x44   : > { %v342_v20 = vld [vmem:[%s5674_s17 + $0x20] sm:$0xff] }
  0x45   : > { %1586 = vmatpush2.bf16.msra.mxu0 %v4780_v56  ;;  %v4851_v56 = vld [vmem:[%s7045_s1 + $0x8] ss:$16 sps:$4 sm:$0xff]  }
  0x46   : > { %1629 = vmatpush2.bf16.msra.mxu1 %v4781_v57  ;;  %1587 = vmatprep.subr.bf16.mxu0 %v4782_v58  ;;  %v4854_v57 = vld [vmem:[%s7045_s1 + $0x5c0] ss:$16 sps:$4 sm:$0xff]   ;;  %v4859_v58 = vld [vmem:[%s7045_s1 + $0x1ec] ss:$16 sps:$4 sm:$0xff]  }
  0x47   : > { %1630 = vmatprep.subr.bf16.mxu1 %v4784_v59  ;;  %v4862_v59 = vld [vmem:[%s7045_s1 + $0x5a4] ss:$16 sps:$4 sm:$0xff]  }
  0x49   : > { %1588 = vmatpush2.bf16.msra.mxu0 %v4786_v60  ;;  %v4857_v60 = vld [vmem:[%s7045_s1 + $0x1e8] ss:$16 sps:$4 sm:$0xff]  }
  0x4a   : > { %1631 = vmatpush2.bf16.msra.mxu1 %v4787_v61  ;;  %1589 = vmatprep.subr.bf16.mxu0 %v4788_v62  ;;  %v4860_v61 = vld [vmem:[%s7045_s1 + $0x5a0] ss:$16 sps:$4 sm:$0xff]   ;;  %v4865_v62 = vld [vmem:[%s7045_s1 + $0x1cc] ss:$16 sps:$4 sm:$0xff]  }
  0x4b   : > { %1632 = vmatprep.subr.bf16.mxu1 %v4790_v63  ;;  %v4868_v63 = vld [vmem:[%s7045_s1 + $0x584] ss:$16 sps:$4 sm:$0xff]  }
  0x4d   : > { %1590 = vmatpush2.bf16.msra.mxu0 %v4792_v0  ;;  %v4863_v0 = vld [vmem:[%s7045_s1 + $0x1c8] ss:$16 sps:$4 sm:$0xff]  }
  0x4e   : > { %1633 = vmatpush2.bf16.msra.mxu1 %v4793_v1  ;;  %1591 = vmatprep.subr.bf16.mxu0 %v4794_v2  ;;  %v4866_v1 = vld [vmem:[%s7045_s1 + $0x580] ss:$16 sps:$4 sm:$0xff]   ;;  %v4871_v2 = vld [vmem:[%s7045_s1 + $0x1ac] ss:$16 sps:$4 sm:$0xff]  }
  0x4f   : > { %1634 = vmatprep.subr.bf16.mxu1 %v4796_v3  ;;  %v4874_v3 = vld [vmem:[%s7045_s1 + $0x564] ss:$16 sps:$4 sm:$0xff]  }
  0x51   : > { %1592 = vmatpush2.bf16.msra.mxu0 %v4798_v4  ;;  %v4869_v4 = vld [vmem:[%s7045_s1 + $0x1a8] ss:$16 sps:$4 sm:$0xff]  }
  0x52   : > { %1635 = vmatpush2.bf16.msra.mxu1 %v4799_v5  ;;  %1647 = vmatprep.subr.bf16.mxu0 %v4802_v10  ;;  %v4872_v5 = vld [vmem:[%s7045_s1 + $0x560] ss:$16 sps:$4 sm:$0xff]   ;;  %v4883_v10 = vld [vmem:[%s7045_s1 + $0x16c] ss:$16 sps:$4 sm:$0xff]  }
  0x53   : > { %1704 = vmatprep.subr.bf16.mxu1 %v4805_v11  ;;  %v4886_v11 = vld [vmem:[%s7045_s1 + $0x524] ss:$16 sps:$4 sm:$0xff]  }
  0x54   : > { %1594 = vmatmul.mubr.bf16.vlgmr.msra.gmra.mxu0 %v5756_v12 }
  0x55   : > { %1637 = vmatmul.mubr.bf16.vlgmr.msra.gmra.mxu1 %v5758_v13  ;;  %1648 = vmatpush1.bf16.msra.mxu0 %v4800_v14  ;;  %v4881_v14 = vld [vmem:[%s7045_s1 + $0x168] ss:$16 sps:$4 sm:$0xff]  }
  0x56   : > { %1705 = vmatpush1.bf16.msra.mxu1 %v4803_v15  ;;  %1649 = vmatprep.subr.bf16.mxu0 %v4808_v16  ;;  %v4884_v15 = vld [vmem:[%s7045_s1 + $0x520] ss:$16 sps:$4 sm:$0xff]   ;;  %v4889_v16 = vld [vmem:[%s7045_s1 + $0x14c] ss:$16 sps:$4 sm:$0xff]  }
  0x57   : > { %1722 = vmatprep.mubr.bf16.mxu1 %v5436_v21  ;;  %1733 = vmatprep.subr.bf16.mxu1 %v4811_v17  ;;  %v4892_v17 = vld [vmem:[%s7045_s1 + $0x504] ss:$16 sps:$4 sm:$0xff]  }
  0x58   : > { %1679 = vmatprep.mubr.bf16.mxu0 %v5844_v44 }
  0x59   : > { %1650 = vmatpush1.bf16.msra.mxu0 %v4806_v18  ;;  %v4887_v18 = vld [vmem:[%s7045_s1 + $0x148] ss:$16 sps:$4 sm:$0xff]  }
  0x5a   : > { %1651 = vmatprep.subr.bf16.mxu0 %v4814_v22  ;;  %v349_v22 = vld [vmem:[%s5674_s17 + $0x58] sm:$0xff]  ;;  %s4659_s17 = smul.u32 112, %s326_s25 }
  0x5c   : > { %s6965_s26 = scalar_lea.vmem [#allocation2], %s4659_s17 }
  0x5d   : > { %4367 = vmatmul.mubr.msk.bf16.vlgmr.msra.gmra.mxu1 %vm1557_vm0, %v5783_v23  ;;  %1652 = vmatpush1.bf16.msra.mxu0 %v4812_v25  ;;  %v4898_v25 = vld [vmem:[%s7045_s1 + $0x2ec] ss:$16 sps:$4 sm:$0xff]   ;;  %s4103_s27 = sshll.u32 %s6965_s26, 4  ;;  %s6998_s27 = int_to_ptr.vmem [resolvable:$true] %s4103_s27 }
  0x5e   : > { %1734 = vmatpush1.bf16.msra.mxu1 %v4809_v24  ;;  %1653 = vmatprep.subr.bf16.mxu0 %v4820_v27  ;;  %v4895_v24 = vld [vmem:[%s7045_s1 + $0x12c] ss:$16 sps:$4 sm:$0xff]   ;;  %v4893_v27 = vld [vmem:[%s7045_s1 + $0x128] ss:$16 sps:$4 sm:$0xff]   ;;  %s5374_s13 = scalar_lea.vmem %s6998_s27, 1792  ;;  %p5381_p0 = scmp.lt.s32.totalorder %s6998_s27, %s5379_s24 }
  0x5f   : > { %1735 = vmatprep.subr.bf16.mxu1 %v4817_v26  ;;  %1765 = vmatprep.mubr.bf16.mxu1 %v5695_v53  ;;  %v4853_v53 = vld [vmem:[%s7045_s1 + $0xc] ss:$16 sps:$4 sm:$0xff]   ;;  %v5963_v26 = vpack.c.bf16 %v349_v22, %v342_v20  ;;  %v4977_v20 = vld [vmem:[%s7045_s1 + $0x568] ss:$16 sps:$4 sm:$0xff]   ;;  %p5375_p11 = scmp.ne.s32.totalorder %s6998_s27, %s5374_s13  ;;  %p5382_p1 = scmp.lt.s32.totalorder %s5380_s29, %s5374_s13 }
  0x60   : > { %v4980_v22 = vld [vmem:[%s7045_s1 + $0x328] ss:$16 sps:$4 sm:$0xff]  }
  0x61   : > { %1654 = vmatpush1.bf16.msra.mxu0 %v4818_v29  ;;  %v4901_v29 = vld [vmem:[%s7045_s1 + $0x10c] ss:$16 sps:$4 sm:$0xff]   ;;  %p5376_p12 = pnand %p5375_p11, %p5528_p5  ;;  %p5383_p2 = por %p5382_p1, %p5381_p0 }
  0x62   : > { %1736 = vmatpush1.bf16.msra.mxu1 %v4815_v28  ;;  %1655 = vmatprep.subr.bf16.mxu0 %v4826_v31  ;;  %v4896_v28 = vld [vmem:[%s7045_s1 + $0x2e8] ss:$16 sps:$4 sm:$0xff]  }
  0x63   : > { %1737 = vmatprep.subr.bf16.mxu1 %v4823_v30  ;;  %v4904_v30 = vld [vmem:[%s7045_s1 + $0x2cc] ss:$16 sps:$4 sm:$0xff]   ;;  %v4899_v31 = vld [vmem:[%s7045_s1 + $0x108] ss:$16 sps:$4 sm:$0xff]   ;;  %p5377_p13 = pneg %p5376_p12 }
  0x65   : > { %1656 = vmatpush1.bf16.msra.mxu0 %v4824_v33  ;;  %v4907_v33 = vld [vmem:[%s7045_s1 + $0x4ec] ss:$16 sps:$4 sm:$0xff]   ;;  %p5384_p3 = pnand %p5383_p2, %p5377_p13 }
  0x66   : > { %1738 = vmatpush1.bf16.msra.mxu1 %v4821_v32  ;;  %1657 = vmatprep.subr.bf16.mxu0 %v4832_v35  ;;  %v4902_v32 = vld [vmem:[%s7045_s1 + $0x2c8] ss:$16 sps:$4 sm:$0xff]  }
  0x67   : > { %1739 = vmatprep.subr.bf16.mxu1 %v4829_v34  ;;  %v4910_v34 = vld [vmem:[%s7045_s1 + $0x2ac] ss:$16 sps:$4 sm:$0xff]   ;;  %v4905_v35 = vld [vmem:[%s7045_s1 + $0x4e8] ss:$16 sps:$4 sm:$0xff]  }
  0x69   : > { %1658 = vmatpush1.bf16.msra.mxu0 %v4830_v37  ;;  %v4913_v37 = vld [vmem:[%s7045_s1 + $0x4cc] ss:$16 sps:$4 sm:$0xff]  }
  0x6a   : > { %1740 = vmatpush1.bf16.msra.mxu1 %v4827_v36  ;;  %1659 = vmatprep.subr.bf16.mxu0 %v4838_v39  ;;  %v4908_v36 = vld [vmem:[%s7045_s1 + $0x2a8] ss:$16 sps:$4 sm:$0xff]  }
  0x6b   : > { %1741 = vmatprep.subr.bf16.mxu1 %v4835_v38  ;;  %v4916_v38 = vld [vmem:[%s7045_s1 + $0x28c] ss:$16 sps:$4 sm:$0xff]   ;;  %v4911_v39 = vld [vmem:[%s7045_s1 + $0x4c8] ss:$16 sps:$4 sm:$0xff]  }
  0x6d   : > { %1660 = vmatpush1.bf16.msra.mxu0 %v4836_v43  ;;  %v4925_v43 = vld [vmem:[%s7045_s1 + $0x48c] ss:$16 sps:$4 sm:$0xff]  }
  0x6e   : > { %1742 = vmatpush1.bf16.msra.mxu1 %v4833_v40  ;;  %1661 = vmatprep.subr.bf16.mxu0 %v4844_v46  ;;  %v4919_v40 = vld [vmem:[%s7045_s1 + $0x4ac] ss:$16 sps:$4 sm:$0xff]   ;;  %v4923_v46 = vld [vmem:[%s7045_s1 + $0x488] ss:$16 sps:$4 sm:$0xff]  }
  0x6f   : > { %1743 = vmatprep.subr.bf16.mxu1 %v4841_v45  ;;  %v4928_v45 = vld [vmem:[%s7045_s1 + $0x24c] ss:$16 sps:$4 sm:$0xff]  }
  0x71   : > { %1662 = vmatpush1.bf16.msra.mxu0 %v4842_v48  ;;  %v4934_v48 = vld [vmem:[%s7045_s1 + $0x22c] ss:$16 sps:$4 sm:$0xff]  }
  0x72   : > { %1744 = vmatpush1.bf16.msra.mxu1 %v4839_v47  ;;  %1663 = vmatprep.subr.bf16.mxu0 %v4850_v50  ;;  %v4931_v47 = vld [vmem:[%s7045_s1 + $0x46c] ss:$16 sps:$4 sm:$0xff]   ;;  %v4932_v50 = vld [vmem:[%s7045_s1 + $0x228] ss:$16 sps:$4 sm:$0xff]  }
  0x73   : > { %1745 = vmatprep.subr.bf16.mxu1 %v4847_v49  ;;  %v4929_v49 = vld [vmem:[%s7045_s1 + $0x468] ss:$16 sps:$4 sm:$0xff]  }
  0x75   : > { %1664 = vmatpush2.bf16.msra.mxu0 %v4848_v52  ;;  %v4940_v52 = vld [vmem:[%s7045_s1 + $0x20c] ss:$16 sps:$4 sm:$0xff]  }
  0x76   : > { %1746 = vmatpush1.bf16.msra.mxu1 %v4845_v51  ;;  %1665 = vmatprep.subr.bf16.mxu0 %v4856_v55  ;;  %v4937_v51 = vld [vmem:[%s7045_s1 + $0x44c] ss:$16 sps:$4 sm:$0xff]   ;;  %v4938_v55 = vld [vmem:[%s7045_s1 + $0x208] ss:$16 sps:$4 sm:$0xff]  }
  0x77   : > { %1747 = vmatprep.subr.bf16.mxu1 %v4853_v53  ;;  %v4935_v53 = vld [vmem:[%s7045_s1 + $0x448] ss:$16 sps:$4 sm:$0xff]  }
  0x79   : > { %1666 = vmatpush2.bf16.msra.mxu0 %v4854_v57  ;;  %v4946_v57 = vld [vmem:[%s7045_s1 + $0x3ec] ss:$16 sps:$4 sm:$0xff]  }
  0x7a   : > { %1748 = vmatpush1.bf16.msra.mxu1 %v4851_v56  ;;  %1667 = vmatprep.subr.bf16.mxu0 %v4862_v59  ;;  %v4943_v56 = vld [vmem:[%s7045_s1 + $0x42c] ss:$16 sps:$4 sm:$0xff]   ;;  %v4944_v59 = vld [vmem:[%s7045_s1 + $0x3e8] ss:$16 sps:$4 sm:$0xff]  }
  0x7b   : > { %1749 = vmatprep.subr.bf16.mxu1 %v4859_v58  ;;  %v4941_v58 = vld [vmem:[%s7045_s1 + $0x428] ss:$16 sps:$4 sm:$0xff]  }
  0x7d   : > { %1668 = vmatpush2.bf16.msra.mxu0 %v4860_v61  ;;  %v4952_v61 = vld [vmem:[%s7045_s1 + $0x3cc] ss:$16 sps:$4 sm:$0xff]  }
  0x7e   : > { %1750 = vmatpush2.bf16.msra.mxu1 %v4857_v60  ;;  %1669 = vmatprep.subr.bf16.mxu0 %v4868_v63  ;;  %v4949_v60 = vld [vmem:[%s7045_s1 + $0x40c] ss:$16 sps:$4 sm:$0xff]   ;;  %v4950_v63 = vld [vmem:[%s7045_s1 + $0x3c8] ss:$16 sps:$4 sm:$0xff]  }
  0x7f   : > { %1751 = vmatprep.subr.bf16.mxu1 %v4865_v62  ;;  %v4947_v62 = vld [vmem:[%s7045_s1 + $0x408] ss:$16 sps:$4 sm:$0xff]  }
  0x81   : > { %1670 = vmatpush2.bf16.msra.mxu0 %v4866_v1  ;;  %v4958_v1 = vld [vmem:[%s7045_s1 + $0x3ac] ss:$16 sps:$4 sm:$0xff]  }
  0x82   : > { %1752 = vmatpush2.bf16.msra.mxu1 %v4863_v0  ;;  %1671 = vmatprep.subr.bf16.mxu0 %v4874_v3  ;;  %v4955_v0 = vld [vmem:[%s7045_s1 + $0x5ec] ss:$16 sps:$4 sm:$0xff]   ;;  %v4956_v3 = vld [vmem:[%s7045_s1 + $0x3a8] ss:$16 sps:$4 sm:$0xff]  }
  0x83   : > { %1753 = vmatprep.subr.bf16.mxu1 %v4871_v2  ;;  %v4953_v2 = vld [vmem:[%s7045_s1 + $0x5e8] ss:$16 sps:$4 sm:$0xff]  }
  0x85   : > { %1672 = vmatpush2.bf16.msra.mxu0 %v4872_v5  ;;  %v4964_v5 = vld [vmem:[%s7045_s1 + $0x38c] ss:$16 sps:$4 sm:$0xff]  }
  0x86   : > { %1754 = vmatpush2.bf16.msra.mxu1 %v4869_v4  ;;  %1673 = vmatprep.subr.bf16.mxu0 %v4880_v7  ;;  %v4961_v4 = vld [vmem:[%s7045_s1 + $0x5cc] ss:$16 sps:$4 sm:$0xff]   ;;  %v4962_v7 = vld [vmem:[%s7045_s1 + $0x388] ss:$16 sps:$4 sm:$0xff]  }
  0x87   : > { %1755 = vmatprep.subr.bf16.mxu1 %v4877_v6  ;;  %v4959_v6 = vld [vmem:[%s7045_s1 + $0x5c8] ss:$16 sps:$4 sm:$0xff]  }
  0x89   : > { %1674 = vmatpush2.bf16.msra.mxu0 %v4878_v9  ;;  %v4970_v9 = vld [vmem:[%s7045_s1 + $0x36c] ss:$16 sps:$4 sm:$0xff]  }
  0x8a   : > { %1756 = vmatpush2.bf16.msra.mxu1 %v4875_v8  ;;  %1675 = vmatprep.subr.bf16.mxu0 %v4886_v11  ;;  %v4967_v8 = vld [vmem:[%s7045_s1 + $0x5ac] ss:$16 sps:$4 sm:$0xff]   ;;  %v4968_v11 = vld [vmem:[%s7045_s1 + $0x368] ss:$16 sps:$4 sm:$0xff]  }
  0x8b   : > { %1757 = vmatprep.subr.bf16.mxu1 %v4883_v10  ;;  %v4965_v10 = vld [vmem:[%s7045_s1 + $0x5a8] ss:$16 sps:$4 sm:$0xff]  }
  0x8d   : > { %1676 = vmatpush2.bf16.msra.mxu0 %v4884_v15  ;;  %v4976_v15 = vld [vmem:[%s7045_s1 + $0x34c] ss:$16 sps:$4 sm:$0xff]  }
  0x8e   : > { %1758 = vmatpush2.bf16.msra.mxu1 %v4881_v14  ;;  %1677 = vmatprep.subr.bf16.mxu0 %v4892_v17  ;;  %v4973_v14 = vld [vmem:[%s7045_s1 + $0x58c] ss:$16 sps:$4 sm:$0xff]   ;;  %v4974_v17 = vld [vmem:[%s7045_s1 + $0x348] ss:$16 sps:$4 sm:$0xff]  }
  0x8f   : > { %1759 = vmatprep.subr.bf16.mxu1 %v4889_v16  ;;  %v4971_v16 = vld [vmem:[%s7045_s1 + $0x588] ss:$16 sps:$4 sm:$0xff]  }
  0x91   : > { %1678 = vmatpush2.bf16.msra.mxu0 %v4890_v19  ;;  %v4982_v19 = vld [vmem:[%s7045_s1 + $0x32c] ss:$16 sps:$4 sm:$0xff]  }
  0x92   : > { %1760 = vmatpush2.bf16.msra.mxu1 %v4887_v18  ;;  %1776 = vmatprep.subr.bf16.mxu0 %v4898_v25  ;;  %v4979_v18 = vld [vmem:[%s7045_s1 + $0x56c] ss:$16 sps:$4 sm:$0xff]  }
  0x93   : > { %1761 = vmatprep.subr.bf16.mxu1 %v4895_v24  ;;  %v4985_v24 = vld [vmem:[%s7045_s1 + $0x54c] ss:$16 sps:$4 sm:$0xff]  }
  0x94   : > { %1680 = vmatmul.mubr.bf16.vlgmr.msra.gmra.mxu0 %v5963_v26  ;;  %v4988_v25 = vld [vmem:[%s7045_s1 + $0x30c] ss:$16 sps:$4 sm:$0xff]  }
  0x95   : > { %1777 = vmatpush1.bf16.msra.mxu0 %v4896_v28  ;;  %1808 = vmatprep.mubr.bf16.mxu0 %v5697_v54  ;;  %v4914_v54 = vld [vmem:[%s7045_s1 + $0x288] ss:$16 sps:$4 sm:$0xff]  }
  0x96   : > { %1762 = vmatpush2.bf16.msra.mxu1 %v4893_v27  ;;  %1778 = vmatprep.subr.bf16.mxu0 %v4904_v30  ;;  %v4983_v27 = vld [vmem:[%s7045_s1 + $0x548] ss:$16 sps:$4 sm:$0xff]  }
  0x97   : > { %1763 = vmatprep.subr.bf16.mxu1 %v4901_v29  ;;  %v4986_v28 = vld [vmem:[%s7045_s1 + $0x308] ss:$16 sps:$4 sm:$0xff]   ;;  %v4991_v29 = vld [vmem:[%s7045_s1 + $0x52c] ss:$16 sps:$4 sm:$0xff]  }
  0x98   : > { %v4998_v30 = vld [vmem:[%s7047_s3 + $0x78] sm:$0xff]  }
  0x99   : > { %1779 = vmatpush1.bf16.msra.mxu0 %v4902_v32  ;;  %v4999_v32 = vld [vmem:[%s7047_s3 + $0x38] sm:$0xff]  }
  0x9a   : > { %1764 = vmatpush2.bf16.msra.mxu1 %v4899_v31  ;;  %1780 = vmatprep.subr.bf16.mxu0 %v4910_v34  ;;  %v4989_v31 = vld [vmem:[%s7045_s1 + $0x528] ss:$16 sps:$4 sm:$0xff]   ;;  %v5000_v34 = vld [vmem:[%s7047_s3 + $0x70] sm:$0xff]  }
  0x9b   : > { %1819 = vmatprep.subr.bf16.mxu1 %v4907_v33  ;;  %v4994_v33 = vld [vmem:[%s7045_s1 + $0x50c] ss:$16 sps:$4 sm:$0xff]  }
  0x9d   : > { %1766 = vmatmul.mubr.bf16.vlgmr.msra.gmra.mxu1 %v5756_v12  ;;  %1781 = vmatpush1.bf16.msra.mxu0 %v4908_v36  ;;  %v4920_v12 = vld [vmem:[%s7045_s1 + $0x268] ss:$16 sps:$4 sm:$0xff]   ;;  %v5001_v36 = vld [vmem:[%s7047_s3 + $0x30] sm:$0xff]  }
  0x9e   : > { %1820 = vmatpush1.bf16.msra.mxu1 %v4905_v35  ;;  %1782 = vmatprep.subr.bf16.mxu0 %v4916_v38  ;;  %v4992_v35 = vld [vmem:[%s7045_s1 + $0x508] ss:$16 sps:$4 sm:$0xff]  }
  0x9f   : > { %1821 = vmatprep.subr.bf16.mxu1 %v4913_v37  ;;  %1851 = vmatprep.mubr.bf16.mxu1 %v5844_v44  ;;  %v4926_v44 = vld [vmem:[%s7045_s1 + $0x248] ss:$16 sps:$4 sm:$0xff]   ;;  %v4997_v37 = vld [vmem:[%s7045_s1 + $0x60c] ss:$16 sps:$4 sm:$0xff]  }
  0xa0   : > { %v5002_v38 = vld [vmem:[%s7047_s3 + $0x68] sm:$0xff]  }
  0xa1   : > { %1783 = vmatpush1.bf16.msra.mxu0 %v4914_v54  ;;  %v5004_v54 = vld [vmem:[%s7047_s3 + $0x60] sm:$0xff]  }
  0xa2   : > { %1822 = vmatpush1.bf16.msra.mxu1 %v4911_v39  ;;  %1784 = vmatprep.subr.bf16.mxu0 %v4922_v41  ;;  %v4995_v39 = vld [vmem:[%s7045_s1 + $0x608] ss:$16 sps:$4 sm:$0xff]  }
  0xa3   : > { %1823 = vmatprep.subr.bf16.mxu1 %v4919_v40  ;;  %v5005_v40 = vld [vmem:[%s7047_s3 + $0x20] sm:$0xff]   ;;  %v5006_v41 = vld [vmem:[%s7047_s3 + $0x58] sm:$0xff]  }
  0xa5   : > { %1785 = vmatpush1.bf16.msra.mxu0 %v4920_v12  ;;  %v5009_v12 = vld [vmem:[%s7047_s3 + $0x10] sm:$0xff]  }
  0xa6   : > { %1824 = vmatpush1.bf16.msra.mxu1 %v4917_v42  ;;  %1786 = vmatprep.subr.bf16.mxu0 %v4928_v45  ;;  %v5007_v42 = vld [vmem:[%s7047_s3 + $0x18] sm:$0xff]   ;;  %v5015_v45 = vld [vmem:[%s7047_s3 + $0xb0] sm:$0xff]  }
  0xa7   : > { %1825 = vmatprep.subr.bf16.mxu1 %v4925_v43  ;;  %v5014_v43 = vld [vmem:[%s7047_s3 + $0xb8] sm:$0xff]  }
  0xa9   : > { %1787 = vmatpush1.bf16.msra.mxu0 %v4926_v44  ;;  %v5012_v44 = vld [vmem:[%s7047_s3 + $0x40] sm:$0xff]  }
  0xaa   : > { %1826 = vmatpush1.bf16.msra.mxu1 %v4923_v46  ;;  %1788 = vmatprep.subr.bf16.mxu0 %v4934_v48  ;;  %v5010_v46 = vld [vmem:[%s7047_s3 + $0x48] sm:$0xff]  }
  0xab   : > { %1827 = vmatprep.subr.bf16.mxu1 %v4931_v47  ;;  %v5013_v47 = vld [vmem:[%s7047_s3] sm:$0xff]   ;;  %v5016_v48 = vld [vmem:[%s7047_s3 + $0xa8] sm:$0xff]  }
  0xad   : > { %1789 = vmatpush1.bf16.msra.mxu0 %v4932_v50  ;;  %v5018_v50 = vld [vmem:[%s7047_s3 + $0x98] sm:$0xff]  }
  0xae   : > { %1828 = vmatpush1.bf16.msra.mxu1 %v4929_v49  ;;  %1790 = vmatprep.subr.bf16.mxu0 %v4940_v52  ;;  %v5017_v49 = vld [vmem:[%s7047_s3 + $0xa0] sm:$0xff]   ;;  %v5020_v52 = vld [vmem:[%s7047_s3 + $0x88] sm:$0xff]  }
  0xaf   : > { %1829 = vmatprep.subr.bf16.mxu1 %v4937_v51  ;;  %v5019_v51 = vld [vmem:[%s7047_s3 + $0x90] sm:$0xff]  }
  0xb1   : > { %1791 = vmatpush1.bf16.msra.mxu0 %v4938_v55  ;;  %v5022_v55 = vld [vmem:[%s7047_s3 + $0xc0] ss:$0 sps:$4 sm:$0xff]  }
  0xb2   : > { %1830 = vmatpush1.bf16.msra.mxu1 %v4935_v53  ;;  %1792 = vmatprep.subr.bf16.mxu0 %v4946_v57  ;;  %v5021_v53 = vld [vmem:[%s7047_s3 + $0x80] sm:$0xff]  }
  0xb3   : > { %1831 = vmatprep.subr.bf16.mxu1 %v4943_v56  ;;  %v2126_v56 = vsel %vm2124_vm1, %v5022_v55, 0 }
  0xb5   : > { %1793 = vmatpush2.bf16.msra.mxu0 %v4944_v59 }
  0xb6   : > { %1832 = vmatpush1.bf16.msra.mxu1 %v4941_v58  ;;  %1794 = vmatprep.subr.bf16.mxu0 %v4952_v61  ;;  %v557_v58 = vlaneseq }
  0xb7   : > { %1833 = vmatprep.subr.bf16.mxu1 %v4949_v60 }
  0xb8   : > { %v6263_v60 = vshrl.u32 %v557_v58, 7 }
  0xb9   : > { %1795 = vmatpush2.bf16.msra.mxu0 %v4950_v63 }
  0xba   : > { %1834 = vmatpush1.bf16.msra.mxu1 %v4947_v62  ;;  %1796 = vmatprep.subr.bf16.mxu0 %v4958_v1  ;;  %v6266_v63 = vsub.s32 1, %v6263_v60 }
  0xbb   : > { %1835 = vmatprep.subr.bf16.mxu1 %v4955_v0  ;;  %v6269_v0 = vsub.s32 0, %v6263_v60 }
  0xbd   : > { %1797 = vmatpush2.bf16.msra.mxu0 %v4956_v3 }
  0xbe   : > { %1836 = vmatpush2.bf16.msra.mxu1 %v4953_v2  ;;  %1798 = vmatprep.subr.bf16.mxu0 %v4964_v5  ;;  %v555_v2 = vld [vmem:[%s7046_s2] sm:$0xf] }
  0xbf   : > { %1837 = vmatprep.subr.bf16.mxu1 %v4961_v4  ;;  %v564_v4 = vrot.slane %v555_v2, %v6266_v63  ;;  %v560_v5 = vrot.slane %v555_v2, %v6269_v0 }
  0xc1   : > { %1799 = vmatpush2.bf16.msra.mxu0 %v4962_v7 }
  0xc2   : > { %1838 = vmatpush2.bf16.msra.mxu1 %v4959_v6  ;;  %1800 = vmatprep.subr.bf16.mxu0 %v4970_v9 }
  0xc3   : > { %1839 = vmatprep.subr.bf16.mxu1 %v4967_v8 }
  0xc5   : > { %1801 = vmatpush2.bf16.msra.mxu0 %v4968_v11 }
  0xc6   : > { %1840 = vmatpush2.bf16.msra.mxu1 %v4965_v10  ;;  %1802 = vmatprep.subr.bf16.mxu0 %v4976_v15 }
  0xc7   : > { %1841 = vmatprep.subr.bf16.mxu1 %v4973_v14 }
  0xc9   : > { %1803 = vmatpush2.bf16.msra.mxu0 %v4974_v17 }
  0xca   : > { %1842 = vmatpush2.bf16.msra.mxu1 %v4971_v16  ;;  %1804 = vmatprep.subr.bf16.mxu0 %v4982_v19 }
  0xcb   : > { %1843 = vmatprep.subr.bf16.mxu1 %v4979_v18 }
  0xcd   : > { %1805 = vmatpush2.bf16.msra.mxu0 %v4980_v22 }
  0xce   : > { %1844 = vmatpush2.bf16.msra.mxu1 %v4977_v20  ;;  %1806 = vmatprep.subr.bf16.mxu0 %v4988_v25 }
  0xcf   : > { %1845 = vmatprep.subr.bf16.mxu1 %v4985_v24 }
  0xd1   : > { %1807 = vmatpush2.bf16.msra.mxu0 %v4986_v28 }
  0xd2   : > { %1846 = vmatpush2.bf16.msra.mxu1 %v4983_v27  ;;  %4615 = vmatprep.subr.bf16.mxu0 %v4998_v30 }
  0xd3   : > { %1847 = vmatprep.subr.bf16.mxu1 %v4991_v29 }
  0xd4   : > { %1809 = vmatmul.mubr.bf16.vlgmr.msra.gmra.mxu0 %v5758_v13  ;;  %v5003_v13 = vld [vmem:[%s7047_s3 + $0x28] sm:$0xff]  }
  0xd5   : > { %4616 = vmatpush3.bf16.msra.mxu0 %v4999_v32 }
  0xd6   : > { %1848 = vmatpush2.bf16.msra.mxu1 %v4989_v31  ;;  %4617 = vmatprep.subr.bf16.mxu0 %v5000_v34 }
  0xd7   : > { %1849 = vmatprep.subr.bf16.mxu1 %v4994_v33 }
  0xd9   : > { %4618 = vmatpush3.bf16.msra.mxu0 %v5001_v36 }
  0xda   : > { %1850 = vmatpush2.bf16.msra.mxu1 %v4992_v35  ;;  %4619 = vmatprep.subr.bf16.mxu0 %v5002_v38 }
  0xdb   : > { %1876 = vmatprep.subr.bf16.mxu1 %v4997_v37 }
  0xdd   : > { %1852 = vmatmul.mubr.bf16.vlgmr.msra.gmra.mxu1 %v5963_v26  ;;  %4620 = vmatpush3.bf16.msra.mxu0 %v5003_v13  ;;  %v5008_v26 = vld [vmem:[%s7047_s3 + $0x50] sm:$0xff]  }
  0xde   : > { %1877 = vmatpush1.bf16.msra.mxu1 %v4995_v39  ;;  %1894 = vmatprep.mubr.bf16.mxu1 %v5436_v21 }
  0xdf   : > { %2169 = vmatprep.subr.bf16.mxu1 %v5436_v21  ;;  %4621 = vmatprep.subr.bf16.mxu0 %v5004_v54 }
  0xe1   : > { %4622 = vmatpush3.bf16.msra.mxu0 %v5005_v40 }
  0xe2   : > { %4623 = vmatprep.subr.bf16.mxu0 %v5006_v41 }
  0xe5   : > { %4368 = vmatmul.mubr.msk.bf16.vlgmr.msra.gmra.mxu1 %vm1557_vm0, %v5783_v23  ;;  %4624 = vmatpush3.bf16.msra.mxu0 %v5007_v42  ;;  %v5011_v23 = vld [vmem:[%s7047_s3 + $0x8] sm:$0xff]  }
  0xe6   : > { %2170 = vmatpush1.bf16.msra.mxu1 %v5014_v43  ;;  %4625 = vmatprep.subr.bf16.mxu0 %v5008_v26 }
  0xe7   : > { %2171 = vmatprep.subr.bf16.mxu1 %v5436_v21 }
  0xe9   : > { %4626 = vmatpush3.bf16.msra.mxu0 %v5009_v12 }
  0xea   : > { %2172 = vmatpush1.bf16.msra.mxu1 %v5015_v45  ;;  %4627 = vmatprep.subr.bf16.mxu0 %v5010_v46  ;;  %v6278_v45 = vsub.s32 3, %v6263_v60  ;;  %v6281_v46 = vsub.s32 2, %v6263_v60 }
  0xeb   : > { %2173 = vmatprep.subr.bf16.mxu1 %v5436_v21 }
  0xed   : > { %4628 = vmatpush3.bf16.msra.mxu0 %v5011_v23 }
  0xee   : > { %4629 = vmatprep.subr.bf16.mxu0 %v5012_v44  ;;  %2174 = vmatpush1.bf16.msra.mxu1 %v5016_v48  ;;  %v572_v48 = vrot.slane %v555_v2, %v6278_v45 }
  0xef   : > { %2175 = vmatprep.subr.bf16.mxu1 %v5436_v21 }
  0xf1   : > { %4630 = vmatpush3.bf16.msra.mxu0 %v5013_v47 }
  0xf2   : > { %2176 = vmatpush1.bf16.msra.mxu1 %v5017_v49  ;;  %v568_v49 = vrot.slane %v555_v2, %v6281_v46 }
  0xf3   : > { %2177 = vmatprep.subr.bf16.mxu1 %v5436_v21 }
  0xf6   : > { %2178 = vmatpush1.bf16.msra.mxu1 %v5018_v50 }
  0xf7   : > { %2179 = vmatprep.subr.bf16.mxu1 %v5436_v21 }
  0xfa   : > { %2180 = vmatpush1.bf16.msra.mxu1 %v5019_v51 }
  0xfb   : > { %2181 = vmatprep.subr.bf16.mxu1 %v5436_v21 }
  0xfe   : > { %2182 = vmatpush1.bf16.msra.mxu1 %v5020_v52 }
  0xff   : > { %2183 = vmatprep.subr.bf16.mxu1 %v5436_v21 }
 0x102   : > { %2184 = vmatpush1.bf16.msra.mxu1 %v5021_v53 }
 0x103   : > { %2199 = vmatprep.subr.bf16.mxu1 %v5436_v21 }
 0x106   : > { %2200 = vmatpush2.bf16.msra.mxu1 %v2126_v56 }
 0x114   : > { %v1595_v61 = vpop.f32.mrf.mxu0 }
 0x115   : > { %v1638_v57 = vpop.f32.mrf.mxu1  ;;  %v1596_v9 = vadd.f32 %v1595_v61, %v560_v5 }
 0x116   : > { %v1597_v1 = vpop.f32.mrf.mxu0 }
 0x117   : > { %v1640_v59 = vpop.f32.mrf.mxu1  ;;  %v1598_v8 = vadd.f32 %v1597_v1, %v564_v4  ;;  %v1639_v18 = vadd.f32 %v1638_v57, %v1596_v9 }
 0x118   : > { %v1599_v6 = vpop.f32.mrf.mxu0 }
 0x119   : > { %v1642_v62 = vpop.f32.mrf.mxu1  ;;  %v1600_v11 = vadd.f32 %v1599_v6, %v560_v5  ;;  %v1641_v16 = vadd.f32 %v1640_v59, %v1598_v8 }
 0x11a   : > { %v1601_v10 = vpop.f32.mrf.mxu0 }
 0x11b   : > { %v1644_v3 = vpop.f32.mrf.mxu1  ;;  %v1602_v17 = vadd.f32 %v1601_v10, %v564_v4  ;;  %v1643_v20 = vadd.f32 %v1642_v62, %v1600_v11 }
 0x11d   : > { %v1724_v7 = vpop.f32.mrf.mxu1  ;;  %v1645_v28 = vadd.f32 %v1644_v3, %v1602_v17  ;;  %v5025_v17 = vld [vmem:[%s7049_s5 + $0xe4] ss:$16 sps:$4 sm:$0xff]  }
 0x11e   : > { %2427 = vmatprep.subr.bf16.mxu0 %v5025_v17 }
 0x11f   : > { %v1726_v14 = vpop.f32.mrf.mxu1 }
 0x121   : > { %v1728_v24 = vpop.f32.mrf.mxu1 }
 0x123   : > { %v1730_v34 = vpop.f32.mrf.mxu1 }
 0x154   : > { %v1681_v15 = vpop.f32.mrf.mxu0 }
 0x155   : > { %v1682_v25 = vadd.f32 %v1681_v15, %v1639_v18 }
 0x156   : > { %v1683_v19 = vpop.f32.mrf.mxu0 }
 0x157   : > { %v1684_v22 = vadd.f32 %v1683_v19, %v1641_v16  ;;  %v1725_v35 = vadd.f32 %v1724_v7, %v1682_v25  ;;  %v5023_v16 = vld [vmem:[%s7049_s5 + $0xe0] ss:$16 sps:$4 sm:$0xff]   ;;  %v5028_v19 = vld [vmem:[%s7049_s5 + $0xec] ss:$16 sps:$4 sm:$0xff]  }
 0x158   : > { %v1685_v27 = vpop.f32.mrf.mxu0  ;;  %2470 = vmatprep.subr.bf16.mxu1 %v5028_v19  ;;  %v5103_v19 = vld [vmem:[%s7051_s7 + $0x4d4] ss:$28 sps:$4 sm:$0xff]  }
 0x159   : > { %v1686_v29 = vadd.f32 %v1685_v27, %v1643_v20  ;;  %v1727_v31 = vadd.f32 %v1726_v14, %v1684_v22  ;;  %v1905_v13 = vmax.f32 %v1725_v35, 0.0  ;;  %v5029_v27 = vld [vmem:[%s7049_s5 + $0xc0] ss:$16 sps:$4 sm:$0xff]   ;;  %v5043_v35 = vld [vmem:[%s7049_s5 + $0x84] ss:$16 sps:$4 sm:$0xff]  }
 0x15a   : > { %v1687_v30 = vpop.f32.mrf.mxu0 }
 0x15b   : > { %v1729_v32 = vadd.f32 %v1728_v24, %v1686_v29  ;;  %v1688_v33 = vadd.f32 %v1687_v30, %v1645_v28  ;;  %v1906_v38 = vmax.f32 %v1727_v31, 0.0  ;;  %v5031_v24 = vld [vmem:[%s7049_s5 + $0xc4] ss:$16 sps:$4 sm:$0xff]   ;;  %v5026_v29 = vld [vmem:[%s7049_s5 + $0xe8] ss:$16 sps:$4 sm:$0xff]  }
 0x15c   : > { %v5037_v30 = vld [vmem:[%s7049_s5 + $0xa4] ss:$16 sps:$4 sm:$0xff]  }
 0x15d   : > { %v1731_v36 = vadd.f32 %v1730_v34, %v1688_v33  ;;  %v1909_v37 = vmax.f32 %v1729_v32, 0.0  ;;  %v1767_v41 = vpop.f32.mrf.mxu1  ;;  %v5034_v32 = vld [vmem:[%s7049_s5 + $0xcc] ss:$16 sps:$4 sm:$0xff]   ;;  %v5035_v33 = vld [vmem:[%s7049_s5 + $0xa0] ss:$16 sps:$4 sm:$0xff]  }
 0x15e   : > { %v1768_v56 = vadd.f32 %v1767_v41, %v568_v49  ;;  %v5032_v34 = vld [vmem:[%s7049_s5 + $0xc8] ss:$16 sps:$4 sm:$0xff]   ;;  %v5055_v41 = vld [vmem:[%s7049_s5 + $0x44] ss:$16 sps:$4 sm:$0xff]  }
 0x15f   : > { %v1910_v39 = vmax.f32 %v1731_v36, 0.0  ;;  %v1913_v40 = vpack.c.bf16 %v1909_v37, %v1905_v13  ;;  %v1769_v42 = vpop.f32.mrf.mxu1  ;;  %v5040_v36 = vld [vmem:[%s7049_s5 + $0xac] ss:$16 sps:$4 sm:$0xff]   ;;  %v5041_v37 = vld [vmem:[%s7049_s5 + $0x80] ss:$16 sps:$4 sm:$0xff]  }
 0x160   : > { %v1770_v53 = vadd.f32 %v1769_v42, %v572_v48  ;;  %v5046_v13 = vld [vmem:[%s7049_s5 + $0x8c] ss:$16 sps:$4 sm:$0xff]  }
 0x161   : > { %v1914_v54 = vpack.c.bf16 %v1910_v39, %v1906_v38  ;;  %v1771_v26 = vpop.f32.mrf.mxu1  ;;  %v5038_v38 = vld [vmem:[%s7049_s5 + $0xa8] ss:$16 sps:$4 sm:$0xff]   ;;  %v5049_v39 = vld [vmem:[%s7049_s5 + $0x64] ss:$16 sps:$4 sm:$0xff]   ;;  %v5052_v42 = vld [vmem:[%s7049_s5 + $0x6c] ss:$16 sps:$4 sm:$0xff]  }
 0x162   : > { %v1772_v55 = vadd.f32 %v1771_v26, %v568_v49  ;;  %v5053_v26 = vld [vmem:[%s7049_s5 + $0x40] ss:$16 sps:$4 sm:$0xff]   ;;  %v5062_v49 = vld [vmem:[%s7049_s5 + $0x28] ss:$16 sps:$4 sm:$0xff]  }
 0x163   : > { %2160 = vmatprep.mubr.bf16.mxu0 %v1914_v54  ;;  %v1773_v43 = vpop.f32.mrf.mxu1  ;;  %v5047_v54 = vld [vmem:[%s7049_s5 + $0x60] ss:$16 sps:$4 sm:$0xff]  }
 0x164   : > { %2161 = vmatmul.mubr.bf16.vlgmr.msra.gmra.mxu0 %v1913_v40  ;;  %v1774_v59 = vadd.f32 %v1773_v43, %v572_v48  ;;  %v5044_v40 = vld [vmem:[%s7049_s5 + $0x88] ss:$16 sps:$4 sm:$0xff]   ;;  %v5058_v43 = vld [vmem:[%s7049_s5 + $0x4c] ss:$16 sps:$4 sm:$0xff]   ;;  %v5059_v48 = vld [vmem:[%s7049_s5 + $0x20] ss:$16 sps:$4 sm:$0xff]  }
 0x165   : > { %2459 = vmatprep.mubr.bf16.mxu0 %v5436_v21  ;;  %2428 = vmatpush1.bf16.msra.mxu0 %v5023_v16  ;;  %v5095_v16 = vld [vmem:[%s7051_s7 + $0x508] ss:$28 sps:$4 sm:$0xff]  }
 0x166   : > { %2429 = vmatprep.subr.bf16.mxu0 %v5031_v24  ;;  %v5079_v24 = vld [vmem:[%s7051_s7 + $0x11c] ss:$28 sps:$4 sm:$0xff]  }
 0x169   : > { %2430 = vmatpush1.bf16.msra.mxu0 %v5029_v27  ;;  %v5077_v27 = vld [vmem:[%s7051_s7 + $0x118] ss:$28 sps:$4 sm:$0xff]  }
 0x16a   : > { %2431 = vmatprep.subr.bf16.mxu0 %v5037_v30  ;;  %v5115_v30 = vld [vmem:[%s7051_s7 + $0x464] ss:$28 sps:$4 sm:$0xff]  }
 0x16d   : > { %2432 = vmatpush1.bf16.msra.mxu0 %v5035_v33  ;;  %v5085_v33 = vld [vmem:[%s7051_s7 + $0xac] ss:$28 sps:$4 sm:$0xff]  }
 0x16e   : > { %2433 = vmatprep.subr.bf16.mxu0 %v5043_v35  ;;  %v5083_v35 = vld [vmem:[%s7051_s7 + $0xa8] ss:$28 sps:$4 sm:$0xff]  }
 0x171   : > { %2434 = vmatpush1.bf16.msra.mxu0 %v5041_v37  ;;  %v5088_v37 = vld [vmem:[%s7051_s7 + $0x74] ss:$28 sps:$4 sm:$0xff]  }
 0x172   : > { %2435 = vmatprep.subr.bf16.mxu0 %v5049_v39  ;;  %v5086_v39 = vld [vmem:[%s7051_s7 + $0x70] ss:$28 sps:$4 sm:$0xff]  }
 0x175   : > { %2436 = vmatpush1.bf16.msra.mxu0 %v5047_v54  ;;  %v5091_v54 = vld [vmem:[%s7051_s7 + $0x3c] ss:$28 sps:$4 sm:$0xff]  }
 0x176   : > { %2437 = vmatprep.subr.bf16.mxu0 %v5055_v41  ;;  %v5094_v41 = vld [vmem:[%s7051_s7 + $0x4] ss:$28 sps:$4 sm:$0xff]  }
 0x179   : > { %2438 = vmatpush1.bf16.msra.mxu0 %v5053_v26  ;;  %v5100_v26 = vld [vmem:[%s7051_s7 + $0x34c] ss:$28 sps:$4 sm:$0xff]  }
 0x194   : > { %v1810_v12 = vpop.f32.mrf.mxu0 }
 0x195   : > { %v1811_v1 = vadd.f32 %v1810_v12, %v1768_v56  ;;  %v5050_v12 = vld [vmem:[%s7049_s5 + $0x68] ss:$16 sps:$4 sm:$0xff]  }
 0x196   : > { %v1812_v23 = vpop.f32.mrf.mxu0  ;;  %v5097_v56 = vld [vmem:[%s7051_s7 + $0x50c] ss:$28 sps:$4 sm:$0xff]  }
 0x197   : > { %v1813_v61 = vadd.f32 %v1812_v23, %v1770_v53  ;;  %v5056_v23 = vld [vmem:[%s7049_s5 + $0x48] ss:$16 sps:$4 sm:$0xff]  }
 0x198   : > { %v1814_v50 = vpop.f32.mrf.mxu0  ;;  %v5068_v53 = vld [vmem:[%s7049_s5 + $0x8] ss:$16 sps:$4 sm:$0xff]  }
 0x199   : > { %v1815_v62 = vadd.f32 %v1814_v50, %v1772_v55  ;;  %v5067_v50 = vld [vmem:[%s7049_s5 + $0x4] ss:$16 sps:$4 sm:$0xff]   ;;  %v5073_v55 = vld [vmem:[%s7051_s7 + $0x18c] ss:$28 sps:$4 sm:$0xff]  }
 0x19a   : > { %v1816_v57 = vpop.f32.mrf.mxu0 }
 0x19b   : > { %v1817_v4 = vadd.f32 %v1816_v57, %v1774_v59 }
 0x19d   : > { %v1853_v44 = vpop.f32.mrf.mxu1 }
 0x19e   : > { %v1854_v7 = vadd.f32 %v1853_v44, %v1811_v1  ;;  %v5061_v44 = vld [vmem:[%s7049_s5 + $0x24] ss:$16 sps:$4 sm:$0xff]   ;;  %v4369_v1 = vld [vmem:[%s7048_s4] ss:$0 sm:$0xff] }
 0x19f   : > { %v1855_v47 = vpop.f32.mrf.mxu1  ;;  %2439 = vmatprep.subr.bf16.mxu0 %v5061_v44  ;;  %v5112_v44 = vld [vmem:[%s7051_s7 + $0x2dc] ss:$28 sps:$4 sm:$0xff]  }
 0x1a0   : > { %v1856_v5 = vadd.f32 %v1855_v47, %v1813_v61  ;;  %v5064_v47 = vld [vmem:[%s7049_s5 + $0x2c] ss:$16 sps:$4 sm:$0xff]   ;;  %2440 = vmatpush1.bf16.msra.mxu0 %v5059_v48  ;;  %v5118_v48 = vld [vmem:[%s7051_s7 + $0x2a4] ss:$28 sps:$4 sm:$0xff]  }
 0x1a1   : > { %v1857_v51 = vpop.f32.mrf.mxu1  ;;  %2441 = vmatprep.subr.bf16.mxu0 %v5067_v50  ;;  %v5124_v50 = vld [vmem:[%s7051_s7 + $0x26c] ss:$28 sps:$4 sm:$0xff]  }
 0x1a2   : > { %v1858_v6 = vadd.f32 %v1857_v51, %v1815_v62  ;;  %v5070_v51 = vld [vmem:[%s7049_s5 + $0xc] ss:$16 sps:$4 sm:$0xff]  }
 0x1a3   : > { %v1859_v52 = vpop.f32.mrf.mxu1 }
 0x1a4   : > { %v1860_v9 = vadd.f32 %v1859_v52, %v1817_v4  ;;  %v5065_v52 = vld [vmem:[%s7049_s5] ss:$16 sps:$4 sm:$0xff]  }
 0x1a5   : > { %v1896_v58 = vpop.f32.mrf.mxu1  ;;  %2442 = vmatpush1.bf16.msra.mxu0 %v5065_v52  ;;  %v5130_v52 = vld [vmem:[%s7051_s7 + $0x234] ss:$28 sps:$4 sm:$0xff]  }
 0x1a6   : > { %v1897_v11 = vadd.f32 %v1896_v58, %v1854_v7  ;;  %3664 = vmatprep.subr.bf16.mxu0 %v5073_v55  ;;  %v5128_v55 = vld [vmem:[%s7051_s7 + $0x230] ss:$28 sps:$4 sm:$0xff]  }
 0x1a7   : > { %v1898_v3 = vpop.f32.mrf.mxu1 }
 0x1a8   : > { %v1899_v2 = vadd.f32 %v1898_v3, %v1856_v5  ;;  %v1907_v25 = vmax.f32 %v1897_v11, 0.0 }
 0x1a9   : > { %v1900_v8 = vpop.f32.mrf.mxu1 }
 0x1aa   : > { %v1901_v10 = vadd.f32 %v1900_v8, %v1858_v6  ;;  %v1908_v20 = vmax.f32 %v1899_v2, 0.0 }
 0x1ab   : > { %v1902_v14 = vpop.f32.mrf.mxu1 }
 0x1ac   : > { %v1903_v15 = vadd.f32 %v1902_v14, %v1860_v9  ;;  %v1911_v18 = vmax.f32 %v1901_v10, 0.0 }
 0x1ae   : > { %v1912_v22 = vmax.f32 %v1903_v15, 0.0  ;;  %v1915_v31 = vpack.c.bf16 %v1911_v18, %v1907_v25  ;;  %v5071_v15 = vld [vmem:[%s7051_s7 + $0x188] ss:$28 sps:$4 sm:$0xff]   ;;  %v5076_v18 = vld [vmem:[%s7051_s7 + $0x154] ss:$28 sps:$4 sm:$0xff]  }
 0x1af   : > { %v5109_v25 = vld [vmem:[%s7051_s7 + $0x49c] ss:$28 sps:$4 sm:$0xff]  }
 0x1b0   : > { %v1916_v28 = vpack.c.bf16 %v1912_v22, %v1908_v20  ;;  %v5074_v20 = vld [vmem:[%s7051_s7 + $0x150] ss:$28 sps:$4 sm:$0xff]  }
 0x1b1   : > { %v5101_v22 = vld [vmem:[%s7051_s7 + $0x4d0] ss:$28 sps:$4 sm:$0xff]  }
 0x1b2   : > { %4395 = vmatprep.mubr.msk.bf16.mxu1 %vm2120_vm2, %v1916_v28  ;;  %v5107_v28 = vld [vmem:[%s7051_s7 + $0x498] ss:$28 sps:$4 sm:$0xff]  }
 0x1b3   : > { %2202 = vmatmul.mubr.bf16.vlgmr.msra.gmra.mxu1 %v1915_v31  ;;  %v5080_v31 = vld [vmem:[%s7051_s7 + $0xe0] ss:$28 sps:$4 sm:$0xff]  }
 0x1b4   : > { %2471 = vmatpush1.bf16.msra.mxu1 %v5026_v29  ;;  %2502 = vmatprep.mubr.bf16.mxu1 %v5436_v21  ;;  %v5082_v29 = vld [vmem:[%s7051_s7 + $0xe4] ss:$28 sps:$4 sm:$0xff]  }
 0x1b5   : > { %2472 = vmatprep.subr.bf16.mxu1 %v5034_v32  ;;  %v5113_v32 = vld [vmem:[%s7051_s7 + $0x460] ss:$28 sps:$4 sm:$0xff]  }
 0x1b8   : > { %2473 = vmatpush1.bf16.msra.mxu1 %v5032_v34  ;;  %v5121_v34 = vld [vmem:[%s7051_s7 + $0x42c] ss:$28 sps:$4 sm:$0xff]  }
 0x1b9   : > { %2474 = vmatprep.subr.bf16.mxu1 %v5040_v36  ;;  %v5119_v36 = vld [vmem:[%s7051_s7 + $0x428] ss:$28 sps:$4 sm:$0xff]  }
 0x1bc   : > { %2475 = vmatpush1.bf16.msra.mxu1 %v5038_v38  ;;  %v5127_v38 = vld [vmem:[%s7051_s7 + $0x3f4] ss:$28 sps:$4 sm:$0xff]  }
 0x1bd   : > { %2476 = vmatprep.subr.bf16.mxu1 %v5046_v13  ;;  %v5125_v13 = vld [vmem:[%s7051_s7 + $0x3f0] ss:$28 sps:$4 sm:$0xff]  }
 0x1c0   : > { %2477 = vmatpush1.bf16.msra.mxu1 %v5044_v40  ;;  %v5089_v40 = vld [vmem:[%s7051_s7 + $0x38] ss:$28 sps:$4 sm:$0xff]  }
 0x1c1   : > { %2478 = vmatprep.subr.bf16.mxu1 %v5052_v42  ;;  %v5092_v42 = vld [vmem:[%s7051_s7] ss:$28 sps:$4 sm:$0xff]  }
 0x1c4   : > { %2479 = vmatpush1.bf16.msra.mxu1 %v5050_v12  ;;  %v5098_v12 = vld [vmem:[%s7051_s7 + $0x348] ss:$28 sps:$4 sm:$0xff]  }
 0x1c5   : > { %2480 = vmatprep.subr.bf16.mxu1 %v5058_v43  ;;  %v5106_v43 = vld [vmem:[%s7051_s7 + $0x314] ss:$28 sps:$4 sm:$0xff]  }
 0x1c8   : > { %2481 = vmatpush1.bf16.msra.mxu1 %v5056_v23  ;;  %v5104_v23 = vld [vmem:[%s7051_s7 + $0x310] ss:$28 sps:$4 sm:$0xff]  }
 0x1c9   : > { %2482 = vmatprep.subr.bf16.mxu1 %v5064_v47  ;;  %v5110_v47 = vld [vmem:[%s7051_s7 + $0x2d8] ss:$28 sps:$4 sm:$0xff]  }
 0x1cc   : > { %2483 = vmatpush1.bf16.msra.mxu1 %v5062_v49  ;;  %v5116_v49 = vld [vmem:[%s7051_s7 + $0x2a0] ss:$28 sps:$4 sm:$0xff]  }
 0x1cd   : > { %2484 = vmatprep.subr.bf16.mxu1 %v5070_v51  ;;  %v5122_v51 = vld [vmem:[%s7051_s7 + $0x268] ss:$28 sps:$4 sm:$0xff]  }
 0x1d0   : > { %2485 = vmatpush1.bf16.msra.mxu1 %v5068_v53  ;;  %v5133_v53 = vld [vmem:[%s7051_s7 + $0x3bc] ss:$28 sps:$4 sm:$0xff]  }
 0x1d1   : > { %3707 = vmatprep.subr.bf16.mxu1 %v5097_v56  ;;  %v5131_v56 = vld [vmem:[%s7051_s7 + $0x3b8] ss:$28 sps:$4 sm:$0xff]  }
 0x224   : > { %v4631_v57 = vpop.f32.mrf.mxu0 }
 0x226   : > { %v4632_v58 = vpop.f32.mrf.mxu0 }
 0x227   : > { %v4633_v62 = vadd.f32 %v4632_v58, %v4631_v57  ;;  %v5136_v57 = vld [vmem:[%s7051_s7 + $0x1fc] ss:$28 sps:$4 sm:$0xff]   ;;  %v5139_v58 = vld [vmem:[%s7051_s7 + $0x384] ss:$28 sps:$4 sm:$0xff]  }
 0x228   : > { %v4634_v59 = vpop.f32.mrf.mxu0 }
 0x229   : > { %v2163_v5 = vadd.f32 %v4633_v62, %v4369_v1  ;;  %v2717_v62 = vld [vmem:[%s7051_s7 + $0x540] sm:$0xff] }
 0x22a   : > { %v4635_v61 = vpop.f32.mrf.mxu0 }
 0x22b   : > { %v4636_v3 = vadd.f32 %v4635_v61, %v4634_v59  ;;  %v5134_v59 = vld [vmem:[%s7051_s7 + $0x1f8] ss:$28 sps:$4 sm:$0xff]   ;;  %v5137_v61 = vld [vmem:[%s7051_s7 + $0x380] ss:$28 sps:$4 sm:$0xff]  }
 0x22d   : > { %v2166_v8 = vadd.f32 %v4636_v3, %v4369_v1  ;;  %v5142_v1 = vld [vmem:[%s7051_s7 + $0x1c4] ss:$28 sps:$4 sm:$0xff]   ;;  %v4597_v3 = vcombine.high %v2717_v62, %v2717_v62 }
 0x273   : > { %v2203_v4 = vpop.f32.mrf.mxu1 }
 0x274   : > { %v2204_v7 = vadd.f32 %v2203_v4, %v2163_v5  ;;  %v4596_v4 = vcombine.low %v2717_v62, %v2717_v62  ;;  %v5140_v5 = vld [vmem:[%s7051_s7 + $0x1c0] ss:$28 sps:$4 sm:$0xff]   ;;  %v5172_v62 = vld [vmem:[%s7051_s7 + $0x430] ss:$28 sps:$4 sm:$0xff]  }
 0x275   : > { %v2205_v6 = vpop.f32.mrf.mxu1 }
 0x276   : > { %v2210_v11 = vmax.f32 %v2204_v7, 0.0  ;;  %v3644_v6 = vsel %vm2124_vm1, %v4596_v4, 0  ;;  %v5147_v7 = vld [vmem:[%s7051_s7 + $0x194] ss:$28 sps:$4 sm:$0xff]  }
 0x277   : > { %v2206_v9 = vpop.f32.mrf.mxu1  ;;  %v5175_v4 = vld [vmem:[%s7051_s7 + $0x78] ss:$28 sps:$4 sm:$0xff]  }
 0x278   : > { %v2207_v2 = vadd.f32 %v2206_v9, %v2166_v8  ;;  %v5150_v8 = vld [vmem:[%s7051_s7 + $0x514] ss:$28 sps:$4 sm:$0xff]   ;;  %v2245_v9 = vld [vmem:[%s7050_s6] sm:$0xf] }
 0x279   : > { %v2208_v10 = vpop.f32.mrf.mxu1 }
 0x27a   : > { %v2211_v14 = vmax.f32 %v2207_v2, 0.0 }
 0x27c   : > { %v2212_v17 = vpack.c.bf16 %v2211_v14, %v2210_v11  ;;  %v2254_v11 = vrot.slane %v2245_v9, %v6266_v63  ;;  %v2262_v14 = vrot.slane %v2245_v9, %v6278_v45 }
 0x27e   : > { %2460 = vmatmul.mubr.bf16.vlgmr.msra.gmra.mxu0 %v2212_v17  ;;  %2503 = vmatmul.mubr.bf16.vlgmr.msra.gmra.mxu1 %v2212_v17 }
 0x27f   : > { %3665 = vmatpush1.bf16.msra.mxu0 %v5071_v15  ;;  %3708 = vmatpush1.bf16.msra.mxu1 %v5095_v16  ;;  %v2250_v15 = vrot.slane %v2245_v9, %v6269_v0  ;;  %v2258_v16 = vrot.slane %v2245_v9, %v6281_v46  ;;  %v5184_v9 = vld [vmem:[%s7051_s7 + $0x3c0] ss:$28 sps:$4 sm:$0xff]  }
 0x280   : > { %3666 = vmatprep.subr.bf16.mxu0 %v5076_v18  ;;  %3709 = vmatprep.subr.bf16.mxu1 %v5103_v19 }
 0x283   : > { %3667 = vmatpush1.bf16.msra.mxu0 %v5074_v20  ;;  %3710 = vmatpush1.bf16.msra.mxu1 %v5101_v22 }
 0x284   : > { %3668 = vmatprep.subr.bf16.mxu0 %v5079_v24  ;;  %3711 = vmatprep.subr.bf16.mxu1 %v5109_v25 }
 0x287   : > { %3669 = vmatpush1.bf16.msra.mxu0 %v5077_v27  ;;  %3712 = vmatpush1.bf16.msra.mxu1 %v5107_v28 }
 0x288   : > { %3670 = vmatprep.subr.bf16.mxu0 %v5082_v29  ;;  %3713 = vmatprep.subr.bf16.mxu1 %v5115_v30 }
 0x28b   : > { %3671 = vmatpush1.bf16.msra.mxu0 %v5080_v31  ;;  %3714 = vmatpush1.bf16.msra.mxu1 %v5113_v32 }
 0x28c   : > { %3672 = vmatprep.subr.bf16.mxu0 %v5085_v33  ;;  %3715 = vmatprep.subr.bf16.mxu1 %v5121_v34 }
 0x28f   : > { %3673 = vmatpush1.bf16.msra.mxu0 %v5083_v35  ;;  %3716 = vmatpush1.bf16.msra.mxu1 %v5119_v36 }
 0x290   : > { %3674 = vmatprep.subr.bf16.mxu0 %v5088_v37  ;;  %3717 = vmatprep.subr.bf16.mxu1 %v5127_v38 }
 0x293   : > { %3675 = vmatpush1.bf16.msra.mxu0 %v5086_v39  ;;  %3718 = vmatpush1.bf16.msra.mxu1 %v5125_v13 }
 0x294   : > { %3676 = vmatprep.subr.bf16.mxu0 %v5091_v54  ;;  %3719 = vmatprep.subr.bf16.mxu1 %v5133_v53  ;;  %v5165_v53 = vld [vmem:[%s7051_s7 + $0xec] ss:$28 sps:$4 sm:$0xff]  }
 0x297   : > { %3677 = vmatpush1.bf16.msra.mxu0 %v5089_v40  ;;  %3720 = vmatpush1.bf16.msra.mxu1 %v5131_v56  ;;  %v5163_v56 = vld [vmem:[%s7051_s7 + $0xe8] ss:$28 sps:$4 sm:$0xff]  }
 0x298   : > { %3678 = vmatprep.subr.bf16.mxu0 %v5094_v41  ;;  %3721 = vmatprep.subr.bf16.mxu1 %v5139_v58  ;;  %v5171_v58 = vld [vmem:[%s7051_s7 + $0xb4] ss:$28 sps:$4 sm:$0xff]  }
 0x29b   : > { %3679 = vmatpush1.bf16.msra.mxu0 %v5092_v42  ;;  %3722 = vmatpush1.bf16.msra.mxu1 %v5137_v61  ;;  %v5145_v42 = vld [vmem:[%s7051_s7 + $0x190] ss:$28 sps:$4 sm:$0xff]  }
 0x29c   : > { %3680 = vmatprep.subr.bf16.mxu0 %v5100_v26  ;;  %4603 = vmatprep.subr.msk.bf16.mxu1 %vm2124_vm1, %v4597_v3  ;;  %v5148_v26 = vld [vmem:[%s7051_s7 + $0x510] ss:$28 sps:$4 sm:$0xff]   ;;  %v5180_v3 = vld [vmem:[%s7051_s7 + $0x3fc] ss:$28 sps:$4 sm:$0xff]  }
 0x29d   : > { %v5169_v61 = vld [vmem:[%s7051_s7 + $0xb0] ss:$28 sps:$4 sm:$0xff]  }
 0x29f   : > { %3681 = vmatpush2.bf16.msra.mxu0 %v5098_v12  ;;  %3738 = vmatpush2.bf16.msra.mxu1 %v3644_v6  ;;  %v5183_v6 = vld [vmem:[%s7051_s7 + $0x44] ss:$28 sps:$4 sm:$0xff]  }
 0x2a0   : > { %3682 = vmatprep.subr.bf16.mxu0 %v5106_v43  ;;  %3750 = vmatprep.subr.bf16.mxu1 %v5147_v7  ;;  %v5186_v7 = vld [vmem:[%s7051_s7 + $0x3c4] ss:$28 sps:$4 sm:$0xff]  }
 0x2a3   : > { %3683 = vmatpush2.bf16.msra.mxu0 %v5104_v23  ;;  %v5153_v23 = vld [vmem:[%s7051_s7 + $0x15c] ss:$28 sps:$4 sm:$0xff]  }
 0x2a4   : > { %3684 = vmatprep.subr.bf16.mxu0 %v5112_v44  ;;  %v5156_v44 = vld [vmem:[%s7051_s7 + $0x4dc] ss:$28 sps:$4 sm:$0xff]  }
 0x2a7   : > { %3685 = vmatpush2.bf16.msra.mxu0 %v5110_v47  ;;  %v5151_v47 = vld [vmem:[%s7051_s7 + $0x158] ss:$28 sps:$4 sm:$0xff]  }
 0x2a8   : > { %3686 = vmatprep.subr.bf16.mxu0 %v5118_v48  ;;  %v5154_v48 = vld [vmem:[%s7051_s7 + $0x4d8] ss:$28 sps:$4 sm:$0xff]  }
 0x2ab   : > { %3687 = vmatpush2.bf16.msra.mxu0 %v5116_v49  ;;  %v5159_v49 = vld [vmem:[%s7051_s7 + $0x124] ss:$28 sps:$4 sm:$0xff]  }
 0x2ac   : > { %3688 = vmatprep.subr.bf16.mxu0 %v5124_v50  ;;  %v5162_v50 = vld [vmem:[%s7051_s7 + $0x4a4] ss:$28 sps:$4 sm:$0xff]  }
 0x2af   : > { %3689 = vmatpush2.bf16.msra.mxu0 %v5122_v51  ;;  %v5157_v51 = vld [vmem:[%s7051_s7 + $0x120] ss:$28 sps:$4 sm:$0xff]  }
 0x2b0   : > { %3690 = vmatprep.subr.bf16.mxu0 %v5130_v52  ;;  %v5160_v52 = vld [vmem:[%s7051_s7 + $0x4a0] ss:$28 sps:$4 sm:$0xff]  }
 0x2b3   : > { %3691 = vmatpush2.bf16.msra.mxu0 %v5128_v55  ;;  %v5168_v55 = vld [vmem:[%s7051_s7 + $0x46c] ss:$28 sps:$4 sm:$0xff]  }
 0x2b4   : > { %3692 = vmatprep.subr.bf16.mxu0 %v5136_v57  ;;  %v5166_v57 = vld [vmem:[%s7051_s7 + $0x468] ss:$28 sps:$4 sm:$0xff]  }
 0x2b7   : > { %3693 = vmatpush2.bf16.msra.mxu0 %v5134_v59  ;;  %v5174_v59 = vld [vmem:[%s7051_s7 + $0x434] ss:$28 sps:$4 sm:$0xff]  }
 0x2b8   : > { %3694 = vmatprep.subr.bf16.mxu0 %v5142_v1  ;;  %v5177_v1 = vld [vmem:[%s7051_s7 + $0x7c] ss:$28 sps:$4 sm:$0xff]  }
 0x2bb   : > { %3695 = vmatpush2.bf16.msra.mxu0 %v5140_v5  ;;  %v5178_v5 = vld [vmem:[%s7051_s7 + $0x3f8] ss:$28 sps:$4 sm:$0xff]  }
 0x2bc   : > { %3793 = vmatprep.subr.bf16.mxu0 %v5150_v8  ;;  %v5181_v8 = vld [vmem:[%s7051_s7 + $0x40] ss:$28 sps:$4 sm:$0xff]  }
 0x33e   : > { %v2461_v2 = vpop.f32.mrf.mxu0  ;;  %v2504_v10 = vpop.f32.mrf.mxu1 }
 0x33f   : > { %v2462_v28 = vadd.f32 %v2461_v2, %v2250_v15  ;;  %v2505_v29 = vadd.f32 %v2504_v10, %v2258_v16  ;;  %v5189_v2 = vld [vmem:[%s7051_s7 + $0xc] ss:$28 sps:$4 sm:$0xff]  }
 0x340   : > { %v2463_v17 = vpop.f32.mrf.mxu0  ;;  %v2506_v18 = vpop.f32.mrf.mxu1  ;;  %v5192_v10 = vld [vmem:[%s7051_s7 + $0x38c] ss:$28 sps:$4 sm:$0xff]  }
 0x341   : > { %v2464_v22 = vadd.f32 %v2463_v17, %v2254_v11  ;;  %v2507_v24 = vadd.f32 %v2506_v18, %v2262_v14  ;;  %v2513_v13 = vmax.f32 %v2462_v28, 0.0  ;;  %v2515_v54 = vmax.f32 %v2505_v29, 0.0  ;;  %v5206_v28 = vld [vmem:[%s7051_s7 + $0x2e4] ss:$28 sps:$4 sm:$0xff]  }
 0x342   : > { %v2465_v19 = vpop.f32.mrf.mxu0  ;;  %v2508_v20 = vpop.f32.mrf.mxu1  ;;  %v5209_v29 = vld [vmem:[%s7051_s7 + $0x164] ss:$28 sps:$4 sm:$0xff]  }
 0x343   : > { %v2466_v25 = vadd.f32 %v2465_v19, %v2250_v15  ;;  %v2509_v27 = vadd.f32 %v2508_v20, %v2258_v16  ;;  %v2514_v36 = vmax.f32 %v2464_v22, 0.0  ;;  %v2516_v37 = vmax.f32 %v2507_v24, 0.0  ;;  %v5190_v15 = vld [vmem:[%s7051_s7 + $0x388] ss:$28 sps:$4 sm:$0xff]   ;;  %v5195_v16 = vld [vmem:[%s7051_s7 + $0x354] ss:$28 sps:$4 sm:$0xff]  }
 0x344   : > { %v2467_v30 = vpop.f32.mrf.mxu0  ;;  %v2510_v31 = vpop.f32.mrf.mxu1  ;;  %v5193_v19 = vld [vmem:[%s7051_s7 + $0x350] ss:$28 sps:$4 sm:$0xff]   ;;  %v5200_v22 = vld [vmem:[%s7051_s7 + $0x31c] ss:$28 sps:$4 sm:$0xff]  }
 0x345   : > { %v2468_v32 = vadd.f32 %v2467_v30, %v2254_v11  ;;  %v2511_v33 = vadd.f32 %v2510_v31, %v2262_v14  ;;  %v2517_v34 = vmax.f32 %v2466_v25, 0.0  ;;  %v2519_v35 = vmax.f32 %v2509_v27, 0.0  ;;  %v2718_v11 = vld [vmem:[%s7051_s7 + $0x548] sm:$0xff]  ;;  %v5203_v24 = vld [vmem:[%s7051_s7 + $0x19c] ss:$28 sps:$4 sm:$0xff]  }
 0x346   : > { %v5187_v14 = vld [vmem:[%s7051_s7 + $0x8] ss:$28 sps:$4 sm:$0xff]   ;;  %v4599_v17 = vcombine.high %v2718_v11, %v2718_v11  ;;  %v4598_v18 = vcombine.low %v2718_v11, %v2718_v11  ;;  %v5198_v25 = vld [vmem:[%s7051_s7 + $0x318] ss:$28 sps:$4 sm:$0xff]   ;;  %v5204_v30 = vld [vmem:[%s7051_s7 + $0x2e0] ss:$28 sps:$4 sm:$0xff]  }
 0x347   : > { %v2518_v38 = vmax.f32 %v2468_v32, 0.0  ;;  %v2520_v39 = vmax.f32 %v2511_v33, 0.0  ;;  %v6558_v12 = vpack.c.bf16 %v2517_v34, %v2513_v13  ;;  %v6560_v43 = vpack.c.bf16 %v2519_v35, %v2515_v54  ;;  %v5201_v27 = vld [vmem:[%s7051_s7 + $0x198] ss:$28 sps:$4 sm:$0xff]   ;;  %v5207_v31 = vld [vmem:[%s7051_s7 + $0x160] ss:$28 sps:$4 sm:$0xff]  }
 0x348   : > { %v3650_v20 = vsel %vm2124_vm1, %v4598_v18, 0  ;;  %v5212_v32 = vld [vmem:[%s7051_s7 + $0x2ac] ss:$28 sps:$4 sm:$0xff]   ;;  %v5224_v13 = vld [vmem:[%s7051_s7 + $0x23c] ss:$28 sps:$4 sm:$0xff]  }
 0x349   : > { %v6548_v40 = vpack.c.bf16 %v2518_v38, %v2514_v36  ;;  %v6550_v41 = vpack.c.bf16 %v2520_v39, %v2516_v37  ;;  %v5215_v33 = vld [vmem:[%s7051_s7 + $0x12c] ss:$28 sps:$4 sm:$0xff]   ;;  %v5218_v36 = vld [vmem:[%s7051_s7 + $0x274] ss:$28 sps:$4 sm:$0xff]   ;;  %v5227_v54 = vld [vmem:[%s7051_s7 + $0xbc] ss:$28 sps:$4 sm:$0xff]  }
 0x34a   : > { %v5210_v34 = vld [vmem:[%s7051_s7 + $0x2a8] ss:$28 sps:$4 sm:$0xff]   ;;  %v5221_v37 = vld [vmem:[%s7051_s7 + $0xf4] ss:$28 sps:$4 sm:$0xff]   ;;  %v5273_v18 = vld [vmem:[%s7051_s7 + $0x400] ss:$28 sps:$4 sm:$0xff]  }
 0x34b   : > { %3696 = vmatprep.mubr.bf16.mxu0 %v6548_v40  ;;  %4604 = vmatprep.mubr.msk.bf16.mxu1 %vm2120_vm2, %v6550_v41  ;;  %v5213_v35 = vld [vmem:[%s7051_s7 + $0x128] ss:$28 sps:$4 sm:$0xff]   ;;  %v5216_v38 = vld [vmem:[%s7051_s7 + $0x270] ss:$28 sps:$4 sm:$0xff]  }
 0x34c   : > { %3697 = vmatmul.mubr.bf16.vlgmr.msra.gmra.mxu0 %v6558_v12  ;;  %3740 = vmatmul.mubr.bf16.vlgmr.msra.gmra.mxu1 %v6560_v43  ;;  %v5219_v39 = vld [vmem:[%s7051_s7 + $0xf0] ss:$28 sps:$4 sm:$0xff]  }
 0x34d   : > { %3751 = vmatpush1.bf16.msra.mxu1 %v5145_v42  ;;  %3794 = vmatpush1.bf16.msra.mxu0 %v5148_v26  ;;  %v5222_v42 = vld [vmem:[%s7051_s7 + $0x238] ss:$28 sps:$4 sm:$0xff]   ;;  %v5264_v11 = vld [vmem:[%s7051_s7 + $0x2b0] ss:$28 sps:$4 sm:$0xff]  }
 0x34e   : > { %3782 = vmatprep.mubr.bf16.mxu1 %v6548_v40  ;;  %4606 = vmatprep.mubr.msk.bf16.mxu0 %vm2120_vm2, %v6550_v41  ;;  %v5225_v26 = vld [vmem:[%s7051_s7 + $0xb8] ss:$28 sps:$4 sm:$0xff]  }
 0x34f   : > { %3752 = vmatprep.subr.bf16.mxu1 %v5153_v23  ;;  %3795 = vmatprep.subr.bf16.mxu0 %v5156_v44  ;;  %v5230_v23 = vld [vmem:[%s7051_s7 + $0x204] ss:$28 sps:$4 sm:$0xff]  }
 0x350   : > { %v5233_v44 = vld [vmem:[%s7051_s7 + $0x84] ss:$28 sps:$4 sm:$0xff]  }
 0x351   : > { %3753 = vmatpush1.bf16.msra.mxu1 %v5151_v47  ;;  %3796 = vmatpush1.bf16.msra.mxu0 %v5154_v48  ;;  %v5228_v47 = vld [vmem:[%s7051_s7 + $0x200] ss:$28 sps:$4 sm:$0xff]  }
 0x352   : > { %3754 = vmatprep.subr.bf16.mxu1 %v5159_v49  ;;  %3797 = vmatprep.subr.bf16.mxu0 %v5162_v50  ;;  %v5231_v48 = vld [vmem:[%s7051_s7 + $0x80] ss:$28 sps:$4 sm:$0xff]   ;;  %v5236_v49 = vld [vmem:[%s7051_s7 + $0x1cc] ss:$28 sps:$4 sm:$0xff]  }
 0x353   : > { %v5239_v50 = vld [vmem:[%s7051_s7 + $0x4c] ss:$28 sps:$4 sm:$0xff]  }
 0x355   : > { %3755 = vmatpush1.bf16.msra.mxu1 %v5157_v51  ;;  %3798 = vmatpush1.bf16.msra.mxu0 %v5160_v52  ;;  %v5234_v51 = vld [vmem:[%s7051_s7 + $0x1c8] ss:$28 sps:$4 sm:$0xff]  }
 0x356   : > { %3756 = vmatprep.subr.bf16.mxu1 %v5165_v53  ;;  %3799 = vmatprep.subr.bf16.mxu0 %v5168_v55  ;;  %v5237_v52 = vld [vmem:[%s7051_s7 + $0x48] ss:$28 sps:$4 sm:$0xff]   ;;  %v5242_v53 = vld [vmem:[%s7051_s7 + $0x14] ss:$28 sps:$4 sm:$0xff]   ;;  %v5245_v55 = vld [vmem:[%s7051_s7 + $0x51c] ss:$28 sps:$4 sm:$0xff]  }
 0x359   : > { %3757 = vmatpush1.bf16.msra.mxu1 %v5163_v56  ;;  %3800 = vmatpush1.bf16.msra.mxu0 %v5166_v57  ;;  %v5240_v56 = vld [vmem:[%s7051_s7 + $0x10] ss:$28 sps:$4 sm:$0xff]   ;;  %v5243_v57 = vld [vmem:[%s7051_s7 + $0x518] ss:$28 sps:$4 sm:$0xff]  }
 0x35a   : > { %3758 = vmatprep.subr.bf16.mxu1 %v5171_v58  ;;  %3801 = vmatprep.subr.bf16.mxu0 %v5174_v59  ;;  %v5248_v58 = vld [vmem:[%s7051_s7 + $0x35c] ss:$28 sps:$4 sm:$0xff]   ;;  %v5251_v59 = vld [vmem:[%s7051_s7 + $0x4e4] ss:$28 sps:$4 sm:$0xff]  }
 0x35d   : > { %3759 = vmatpush1.bf16.msra.mxu1 %v5169_v61  ;;  %3802 = vmatpush1.bf16.msra.mxu0 %v5172_v62  ;;  %v5246_v61 = vld [vmem:[%s7051_s7 + $0x358] ss:$28 sps:$4 sm:$0xff]   ;;  %v5249_v62 = vld [vmem:[%s7051_s7 + $0x4e0] ss:$28 sps:$4 sm:$0xff]  }
 0x35e   : > { %3760 = vmatprep.subr.bf16.mxu1 %v5177_v1  ;;  %3803 = vmatprep.subr.bf16.mxu0 %v5180_v3  ;;  %v5254_v1 = vld [vmem:[%s7051_s7 + $0x324] ss:$28 sps:$4 sm:$0xff]   ;;  %v5257_v3 = vld [vmem:[%s7051_s7 + $0x4ac] ss:$28 sps:$4 sm:$0xff]  }
 0x361   : > { %3761 = vmatpush1.bf16.msra.mxu1 %v5175_v4  ;;  %3804 = vmatpush1.bf16.msra.mxu0 %v5178_v5  ;;  %v5252_v4 = vld [vmem:[%s7051_s7 + $0x320] ss:$28 sps:$4 sm:$0xff]   ;;  %v5255_v5 = vld [vmem:[%s7051_s7 + $0x4a8] ss:$28 sps:$4 sm:$0xff]  }
 0x362   : > { %3762 = vmatprep.subr.bf16.mxu1 %v5183_v6  ;;  %3805 = vmatprep.subr.bf16.mxu0 %v5186_v7  ;;  %v5260_v6 = vld [vmem:[%s7051_s7 + $0x2ec] ss:$28 sps:$4 sm:$0xff]   ;;  %v5263_v7 = vld [vmem:[%s7051_s7 + $0x474] ss:$28 sps:$4 sm:$0xff]  }
 0x365   : > { %3763 = vmatpush1.bf16.msra.mxu1 %v5181_v8  ;;  %3806 = vmatpush1.bf16.msra.mxu0 %v5184_v9  ;;  %v5258_v8 = vld [vmem:[%s7051_s7 + $0x2e8] ss:$28 sps:$4 sm:$0xff]   ;;  %v5261_v9 = vld [vmem:[%s7051_s7 + $0x470] ss:$28 sps:$4 sm:$0xff]  }
 0x366   : > { %3764 = vmatprep.subr.bf16.mxu1 %v5189_v2  ;;  %3807 = vmatprep.subr.bf16.mxu0 %v5192_v10  ;;  %v5266_v2 = vld [vmem:[%s7051_s7 + $0x2b4] ss:$28 sps:$4 sm:$0xff]   ;;  %v5269_v10 = vld [vmem:[%s7051_s7 + $0x43c] ss:$28 sps:$4 sm:$0xff]  }
 0x369   : > { %3765 = vmatpush1.bf16.msra.mxu1 %v5187_v14  ;;  %3808 = vmatpush1.bf16.msra.mxu0 %v5190_v15  ;;  %v5267_v14 = vld [vmem:[%s7051_s7 + $0x438] ss:$28 sps:$4 sm:$0xff]  }
 0x36a   : > { %3766 = vmatprep.subr.bf16.mxu1 %v5195_v16  ;;  %4605 = vmatprep.subr.msk.bf16.mxu0 %vm2124_vm1, %v4599_v17  ;;  %v5272_v15 = vld [vmem:[%s7051_s7 + $0x27c] ss:$28 sps:$4 sm:$0xff]   ;;  %v5275_v16 = vld [vmem:[%s7051_s7 + $0x404] ss:$28 sps:$4 sm:$0xff]  }
 0x36b   : > { %v5270_v17 = vld [vmem:[%s7051_s7 + $0x278] ss:$28 sps:$4 sm:$0xff]  }
 0x36d   : > { %3767 = vmatpush2.bf16.msra.mxu1 %v5193_v19  ;;  %3824 = vmatpush2.bf16.msra.mxu0 %v3650_v20  ;;  %v5278_v19 = vld [vmem:[%s7051_s7 + $0x244] ss:$28 sps:$4 sm:$0xff]   ;;  %v5281_v20 = vld [vmem:[%s7051_s7 + $0x3cc] ss:$28 sps:$4 sm:$0xff]  }
 0x36e   : > { %3768 = vmatprep.subr.bf16.mxu1 %v5200_v22  ;;  %3836 = vmatprep.subr.bf16.mxu0 %v5203_v24  ;;  %v5276_v22 = vld [vmem:[%s7051_s7 + $0x240] ss:$28 sps:$4 sm:$0xff]   ;;  %v5279_v24 = vld [vmem:[%s7051_s7 + $0x3c8] ss:$28 sps:$4 sm:$0xff]  }
 0x370   : > { %3826 = vmatmul.mubr.bf16.vlgmr.msra.gmra.mxu0 %v6560_v43 }
 0x371   : > { %3769 = vmatpush2.bf16.msra.mxu1 %v5198_v25  ;;  %3837 = vmatpush1.bf16.msra.mxu0 %v5201_v27  ;;  %v5284_v25 = vld [vmem:[%s7051_s7 + $0x20c] ss:$28 sps:$4 sm:$0xff]   ;;  %v5287_v27 = vld [vmem:[%s7051_s7 + $0x394] ss:$28 sps:$4 sm:$0xff]  }
 0x372   : > { %3868 = vmatprep.mubr.bf16.mxu0 %v6548_v40  ;;  %3770 = vmatprep.subr.bf16.mxu1 %v5206_v28  ;;  %v2719_v28 = vld [vmem:[%s7051_s7 + $0x550] sm:$0xff] }
 0x373   : > { %3838 = vmatprep.subr.bf16.mxu0 %v5209_v29  ;;  %v5282_v29 = vld [vmem:[%s7051_s7 + $0x208] ss:$28 sps:$4 sm:$0xff]  }
 0x375   : > { %3771 = vmatpush2.bf16.msra.mxu1 %v5204_v30  ;;  %3839 = vmatpush1.bf16.msra.mxu0 %v5207_v31  ;;  %v5285_v30 = vld [vmem:[%s7051_s7 + $0x390] ss:$28 sps:$4 sm:$0xff]  }
 0x376   : > { %3772 = vmatprep.subr.bf16.mxu1 %v5212_v32  ;;  %3840 = vmatprep.subr.bf16.mxu0 %v5215_v33  ;;  %v5290_v31 = vld [vmem:[%s7051_s7 + $0x1d4] ss:$28 sps:$4 sm:$0xff]   ;;  %v4601_v32 = vcombine.high %v2719_v28, %v2719_v28  ;;  %v4600_v33 = vcombine.low %v2719_v28, %v2719_v28 }
 0x379   : > { %3773 = vmatpush2.bf16.msra.mxu1 %v5210_v34  ;;  %3841 = vmatpush1.bf16.msra.mxu0 %v5213_v35  ;;  %v5288_v34 = vld [vmem:[%s7051_s7 + $0x1d0] ss:$28 sps:$4 sm:$0xff]   ;;  %v3656_v35 = vsel %vm2124_vm1, %v4600_v33, 0 }
 0x37a   : > { %3774 = vmatprep.subr.bf16.mxu1 %v5218_v36  ;;  %3842 = vmatprep.subr.bf16.mxu0 %v5221_v37  ;;  %v5293_v36 = vld [vmem:[%s7051_s7 + $0x360] ss:$28 sps:$4 sm:$0xff]  }
 0x37b   : > { %v5294_v37 = vld [vmem:[%s7051_s7 + $0x1a0] ss:$28 sps:$4 sm:$0xff]  }
 0x37d   : > { %3775 = vmatpush2.bf16.msra.mxu1 %v5216_v38  ;;  %3843 = vmatpush1.bf16.msra.mxu0 %v5219_v39  ;;  %v5295_v38 = vld [vmem:[%s7051_s7 + $0x520] ss:$28 sps:$4 sm:$0xff]   ;;  %v5296_v39 = vld [vmem:[%s7051_s7 + $0x328] ss:$28 sps:$4 sm:$0xff]  }
 0x37e   : > { %3776 = vmatprep.subr.bf16.mxu1 %v5224_v13  ;;  %3844 = vmatprep.subr.bf16.mxu0 %v5227_v54  ;;  %v5297_v13 = vld [vmem:[%s7051_s7 + $0x168] ss:$28 sps:$4 sm:$0xff]  }
 0x37f   : > { %v5298_v54 = vld [vmem:[%s7051_s7 + $0x4e8] ss:$28 sps:$4 sm:$0xff]  }
 0x381   : > { %3777 = vmatpush2.bf16.msra.mxu1 %v5222_v42  ;;  %3845 = vmatpush1.bf16.msra.mxu0 %v5225_v26  ;;  %v5299_v42 = vld [vmem:[%s7051_s7 + $0x2f0] ss:$28 sps:$4 sm:$0xff]   ;;  %v5302_v26 = vld [vmem:[%s7051_s7 + $0x2b8] ss:$28 sps:$4 sm:$0xff]  }
 0x382   : > { %3778 = vmatprep.subr.bf16.mxu1 %v5230_v23  ;;  %3846 = vmatprep.subr.bf16.mxu0 %v5233_v44  ;;  %v5303_v23 = vld [vmem:[%s7051_s7 + $0xf8] ss:$28 sps:$4 sm:$0xff]  }
 0x383   : > { %v5304_v44 = vld [vmem:[%s7051_s7 + $0x478] ss:$28 sps:$4 sm:$0xff]  }
 0x385   : > { %3779 = vmatpush2.bf16.msra.mxu1 %v5228_v47  ;;  %3847 = vmatpush1.bf16.msra.mxu0 %v5231_v48  ;;  %v5305_v47 = vld [vmem:[%s7051_s7 + $0x280] ss:$28 sps:$4 sm:$0xff]  }
 0x386   : > { %3780 = vmatprep.subr.bf16.mxu1 %v5236_v49  ;;  %3848 = vmatprep.subr.bf16.mxu0 %v5239_v50  ;;  %v5306_v48 = vld [vmem:[%s7051_s7 + $0xc0] ss:$28 sps:$4 sm:$0xff]   ;;  %v5308_v50 = vld [vmem:[%s7051_s7 + $0x248] ss:$28 sps:$4 sm:$0xff]  }
 0x387   : > { %v5307_v49 = vld [vmem:[%s7051_s7 + $0x440] ss:$28 sps:$4 sm:$0xff]  }
 0x389   : > { %3781 = vmatpush2.bf16.msra.mxu1 %v5234_v51  ;;  %3849 = vmatpush1.bf16.msra.mxu0 %v5237_v52  ;;  %v5309_v51 = vld [vmem:[%s7051_s7 + $0x88] ss:$28 sps:$4 sm:$0xff]  }
 0x38a   : > { %3850 = vmatprep.subr.bf16.mxu0 %v5242_v53  ;;  %3879 = vmatprep.subr.bf16.mxu1 %v5245_v55  ;;  %v5310_v52 = vld [vmem:[%s7051_s7 + $0x408] ss:$28 sps:$4 sm:$0xff]   ;;  %v5311_v53 = vld [vmem:[%s7051_s7 + $0x210] ss:$28 sps:$4 sm:$0xff]  }
 0x38b   : > { %v5312_v55 = vld [vmem:[%s7051_s7 + $0x50] ss:$28 sps:$4 sm:$0xff]  }
 0x38c   : > { %3783 = vmatmul.mubr.bf16.vlgmr.msra.gmra.mxu1 %v6558_v12 }
 0x38d   : > { %3851 = vmatpush1.bf16.msra.mxu0 %v5240_v56  ;;  %3880 = vmatpush1.bf16.msra.mxu1 %v5243_v57  ;;  %v5313_v56 = vld [vmem:[%s7051_s7 + $0x3d0] ss:$28 sps:$4 sm:$0xff]   ;;  %v5314_v57 = vld [vmem:[%s7051_s7 + $0x1d8] ss:$28 sps:$4 sm:$0xff]  }
 0x38e   : > { %4608 = vmatprep.mubr.msk.bf16.mxu1 %vm2120_vm2, %v6550_v41  ;;  %3852 = vmatprep.subr.bf16.mxu0 %v5248_v58  ;;  %v5315_v58 = vld [vmem:[%s7051_s7 + $0x18] ss:$28 sps:$4 sm:$0xff]  }
 0x38f   : > { %3881 = vmatprep.subr.bf16.mxu1 %v5251_v59  ;;  %v5316_v59 = vld [vmem:[%s7051_s7 + $0x398] ss:$28 sps:$4 sm:$0xff]  }
 0x391   : > { %3853 = vmatpush2.bf16.msra.mxu0 %v5246_v61  ;;  %3882 = vmatpush1.bf16.msra.mxu1 %v5249_v62  ;;  %v5317_v61 = vld [vmem:[%s7051_s7 + $0x558] ss:$0 sps:$4 sm:$0xff]  }
 0x392   : > { %3854 = vmatprep.subr.bf16.mxu0 %v5254_v1  ;;  %3883 = vmatprep.subr.bf16.mxu1 %v5257_v3  ;;  %v3662_v62 = vsel %vm2124_vm1, %v5317_v61, 0  ;;  %v6956_v1 = vld [vmem:[%s7052_s8] sm:$0x7f] }
 0x393   : > { %v2726_v3 = vrot.slane %v6956_v1, %v6269_v0 }
 0x395   : > { %3855 = vmatpush2.bf16.msra.mxu0 %v5252_v4  ;;  %3884 = vmatpush1.bf16.msra.mxu1 %v5255_v5  ;;  %v2730_v4 = vrot.slane %v6956_v1, %v6266_v63 }
 0x396   : > { %3856 = vmatprep.subr.bf16.mxu0 %v5260_v6  ;;  %3885 = vmatprep.subr.bf16.mxu1 %v5263_v7 }
 0x399   : > { %3857 = vmatpush2.bf16.msra.mxu0 %v5258_v8  ;;  %3886 = vmatpush1.bf16.msra.mxu1 %v5261_v9 }
 0x39a   : > { %3858 = vmatprep.subr.bf16.mxu0 %v5266_v2  ;;  %3887 = vmatprep.subr.bf16.mxu1 %v5269_v10 }
 0x39d   : > { %3859 = vmatpush2.bf16.msra.mxu0 %v5264_v11  ;;  %3888 = vmatpush1.bf16.msra.mxu1 %v5267_v14 }
 0x39e   : > { %3860 = vmatprep.subr.bf16.mxu0 %v5272_v15  ;;  %3889 = vmatprep.subr.bf16.mxu1 %v5275_v16 }
 0x3a1   : > { %3861 = vmatpush2.bf16.msra.mxu0 %v5270_v17  ;;  %3890 = vmatpush1.bf16.msra.mxu1 %v5273_v18 }
 0x3a2   : > { %3862 = vmatprep.subr.bf16.mxu0 %v5278_v19  ;;  %3891 = vmatprep.subr.bf16.mxu1 %v5281_v20 }
 0x3a5   : > { %3863 = vmatpush2.bf16.msra.mxu0 %v5276_v22  ;;  %3892 = vmatpush1.bf16.msra.mxu1 %v5279_v24 }
 0x3a6   : > { %3864 = vmatprep.subr.bf16.mxu0 %v5284_v25  ;;  %3893 = vmatprep.subr.bf16.mxu1 %v5287_v27 }
 0x3a9   : > { %3865 = vmatpush2.bf16.msra.mxu0 %v5282_v29  ;;  %3894 = vmatpush1.bf16.msra.mxu1 %v5285_v30 }
 0x3aa   : > { %3866 = vmatprep.subr.bf16.mxu0 %v5290_v31  ;;  %4607 = vmatprep.subr.msk.bf16.mxu1 %vm2124_vm1, %v4601_v32 }
 0x3ad   : > { %3867 = vmatpush2.bf16.msra.mxu0 %v5288_v34  ;;  %3910 = vmatpush2.bf16.msra.mxu1 %v3656_v35 }
 0x3ae   : > { %4637 = vmatprep.subr.bf16.mxu1 %v5293_v36  ;;  %3963 = vmatprep.subr.bf16.mxu0 %v5436_v21 }
 0x3b0   : > { %3869 = vmatmul.mubr.bf16.vlgmr.msra.gmra.mxu0 %v6558_v12  ;;  %3912 = vmatmul.mubr.bf16.vlgmr.msra.gmra.mxu1 %v6560_v43 }
 0x3b1   : > { %4638 = vmatpush3.bf16.msra.mxu1 %v5294_v37  ;;  %3954 = vmatprep.mubr.bf16.mxu1 %v6548_v40  ;;  %v5300_v40 = vld [vmem:[%s7051_s7 + $0x130] ss:$28 sps:$4 sm:$0xff]  }
 0x3b2   : > { %3964 = vmatpush1.bf16.msra.mxu0 %v5295_v38  ;;  %4609 = vmatprep.mubr.msk.bf16.mxu0 %vm2120_vm2, %v6550_v41  ;;  %v5301_v41 = vld [vmem:[%s7051_s7 + $0x4b0] ss:$28 sps:$4 sm:$0xff]  }
 0x3b3   : > { %4639 = vmatprep.subr.bf16.mxu1 %v5296_v39  ;;  %3965 = vmatprep.subr.bf16.mxu0 %v5436_v21 }
 0x3b5   : > { %4640 = vmatpush3.bf16.msra.mxu1 %v5297_v13 }
 0x3b6   : > { %3966 = vmatpush1.bf16.msra.mxu0 %v5298_v54  ;;  %4641 = vmatprep.subr.bf16.mxu1 %v5299_v42  ;;  %v2734_v54 = vrot.slane %v6956_v1, %v6281_v46  ;;  %v2738_v42 = vrot.slane %v6956_v1, %v6278_v45 }
 0x3b7   : > { %3967 = vmatprep.subr.bf16.mxu0 %v5436_v21 }
 0x3b9   : > { %4642 = vmatpush3.bf16.msra.mxu1 %v5300_v40 }
 0x3ba   : > { %3968 = vmatpush1.bf16.msra.mxu0 %v5301_v41  ;;  %4643 = vmatprep.subr.bf16.mxu1 %v5302_v26 }
 0x3bb   : > { %3969 = vmatprep.subr.bf16.mxu0 %v5436_v21 }
 0x3bd   : > { %4644 = vmatpush3.bf16.msra.mxu1 %v5303_v23 }
 0x3be   : > { %3970 = vmatpush1.bf16.msra.mxu0 %v5304_v44  ;;  %4645 = vmatprep.subr.bf16.mxu1 %v5305_v47 }
 0x3bf   : > { %3971 = vmatprep.subr.bf16.mxu0 %v5436_v21 }
 0x3c1   : > { %4646 = vmatpush3.bf16.msra.mxu1 %v5306_v48 }
 0x3c2   : > { %3972 = vmatpush1.bf16.msra.mxu0 %v5307_v49  ;;  %4647 = vmatprep.subr.bf16.mxu1 %v5308_v50 }
 0x3c3   : > { %3973 = vmatprep.subr.bf16.mxu0 %v5436_v21 }
 0x3c5   : > { %4648 = vmatpush3.bf16.msra.mxu1 %v5309_v51 }
 0x3c6   : > { %3974 = vmatpush1.bf16.msra.mxu0 %v5310_v52  ;;  %4649 = vmatprep.subr.bf16.mxu1 %v5311_v53 }
 0x3c7   : > { %3975 = vmatprep.subr.bf16.mxu0 %v5436_v21 }
 0x3c9   : > { %4650 = vmatpush3.bf16.msra.mxu1 %v5312_v55 }
 0x3ca   : > { %3976 = vmatpush1.bf16.msra.mxu0 %v5313_v56  ;;  %4651 = vmatprep.subr.bf16.mxu1 %v5314_v57 }
 0x3cb   : > { %3977 = vmatprep.subr.bf16.mxu0 %v5436_v21 }
 0x3cd   : > { %4652 = vmatpush3.bf16.msra.mxu1 %v5315_v58 }
 0x3ce   : > { %3978 = vmatpush1.bf16.msra.mxu0 %v5316_v59 }
 0x3cf   : > { %3993 = vmatprep.subr.bf16.mxu0 %v5436_v21 }
 0x3d0   : > { %3955 = vmatmul.mubr.bf16.vlgmr.msra.gmra.mxu1 %v6558_v12 }
 0x3d2   : > { %3994 = vmatpush2.bf16.msra.mxu0 %v3662_v62 }
 0x3d5   : > { %3996 = vmatmul.mubr.bf16.vlgmr.msra.gmra.mxu0 %v6560_v43 }
 0x40c   : > { %v3698_v5 = vpop.f32.mrf.mxu0  ;;  %v3741_v21 = vpop.f32.mrf.mxu1 }
 0x40d   : > { %v3699_v6 = vadd.f32 %v3698_v5, %v2726_v3 }
 0x40e   : > { %v3700_v7 = vpop.f32.mrf.mxu0  ;;  %v3743_v8 = vpop.f32.mrf.mxu1 }
 0x40f   : > { %v3742_v12 = vadd.f32 %v3741_v21, %v3699_v6  ;;  %v3701_v9 = vadd.f32 %v3700_v7, %v2730_v4 }
 0x410   : > { %v3702_v2 = vpop.f32.mrf.mxu0  ;;  %v3745_v43 = vpop.f32.mrf.mxu1 }
 0x411   : > { %v4004_v10 = vsub.f32 0.0, %v3742_v12  ;;  %v3744_v11 = vadd.f32 %v3743_v8, %v3701_v9  ;;  %v3703_v14 = vadd.f32 %v3702_v2, %v2726_v3 }
 0x412   : > { %v3704_v15 = vpop.f32.mrf.mxu0  ;;  %v3747_v19 = vpop.f32.mrf.mxu1 }
 0x413   : > { %v4018_v16 = vmul.f32 1.442695, %v4004_v10  ;;  %v4005_v17 = vsub.f32 0.0, %v3744_v11  ;;  %v3746_v18 = vadd.f32 %v3745_v43, %v3703_v14  ;;  %v3705_v0 = vadd.f32 %v3704_v15, %v2730_v4 }
 0x414   : > { %v2741_v43 = vsub.s32 4, %v6263_v60  ;;  %v2745_v10 = vsub.s32 5, %v6263_v60 }
 0x415   : > { %5318 = vpow2.f32 %v4018_v16  ;;  %v4020_v63 = vmul.f32 1.442695, %v4005_v17  ;;  %v4011_v20 = vsub.f32 0.0, %v3746_v18  ;;  %v3748_v22 = vadd.f32 %v3747_v19, %v3705_v0 }
 0x416   : > { %v2742_v11 = vrot.slane %v6956_v1, %v2741_v43  ;;  %v2746_v14 = vrot.slane %v6956_v1, %v2745_v10 }
 0x417   : > { %5320 = vpow2.f32 %v4020_v63  ;;  %v4032_v24 = vmul.f32 1.442695, %v4011_v20  ;;  %v4012_v25 = vsub.f32 0.0, %v3748_v22 }
 0x419   : > { %5322 = vpow2.f32 %v4032_v24  ;;  %v4034_v27 = vmul.f32 1.442695, %v4012_v25 }
 0x41b   : > { %5324 = vpow2.f32 %v4034_v27 }
 0x422   : > { %v5319_v28 = vpop.eup %5318 }
 0x423   : > { %v4046_v29 = vadd.f32 1.0, %v5319_v28 }
 0x424   : > { %v5321_v30 = vpop.eup %5320 }
 0x425   : > { %5326 = vrcp.f32 %v4046_v29  ;;  %v4047_v31 = vadd.f32 1.0, %v5321_v30 }
 0x426   : > { %v5323_v32 = vpop.eup %5322 }
 0x427   : > { %5328 = vrcp.f32 %v4047_v31  ;;  %v4053_v33 = vadd.f32 1.0, %v5323_v32 }
 0x428   : > { %v5325_v34 = vpop.eup %5324 }
 0x429   : > { %5330 = vrcp.f32 %v4053_v33  ;;  %v4054_v35 = vadd.f32 1.0, %v5325_v34 }
 0x42b   : > { %5332 = vrcp.f32 %v4054_v35 }
 0x430   : > { %v3827_v13 = vpop.f32.mrf.mxu0 }
 0x432   : > { %v5327_v36 = vpop.eup %5326  ;;  %v3829_v40 = vpop.f32.mrf.mxu0 }
 0x433   : > { %4074 = vst [vmem:[%s6965_s26] sm:$0xff] %v5327_v36 }
 0x434   : > { %v5329_v37 = vpop.eup %5328  ;;  %v3831_v48 = vpop.f32.mrf.mxu0 }
 0x435   : > { %4075 = vst [vmem:[%s6965_s26 + $0x8] sm:$0xff] %v5329_v37 }
 0x436   : > { %v5331_v38 = vpop.eup %5330  ;;  %v3833_v46 = vpop.f32.mrf.mxu0 }
 0x437   : > { %4081 = vst [vmem:[%s6965_s26 + $0x38] sm:$0xff] %v5331_v38 }
 0x438   : > { %v5333_v39 = vpop.eup %5332 }
 0x439   : > { %4082 = vst [vmem:[%s6965_s26 + $0x40] sm:$0xff] %v5333_v39 }
 0x44c   : > { %v3784_v41 = vpop.f32.mrf.mxu1 }
 0x44d   : > { %v3785_v26 = vadd.f32 %v3784_v41, %v2734_v54 }
 0x44e   : > { %v3786_v23 = vpop.f32.mrf.mxu1 }
 0x44f   : > { %v3828_v44 = vadd.f32 %v3827_v13, %v3785_v26  ;;  %v3787_v47 = vadd.f32 %v3786_v23, %v2738_v42 }
 0x450   : > { %v3788_v49 = vpop.f32.mrf.mxu1 }
 0x451   : > { %v4006_v50 = vsub.f32 0.0, %v3828_v44  ;;  %v3830_v51 = vadd.f32 %v3829_v40, %v3787_v47  ;;  %v3789_v52 = vadd.f32 %v3788_v49, %v2734_v54 }
 0x452   : > { %v3790_v53 = vpop.f32.mrf.mxu1 }
 0x453   : > { %v4022_v55 = vmul.f32 1.442695, %v4006_v50  ;;  %v4007_v56 = vsub.f32 0.0, %v3830_v51  ;;  %v3832_v57 = vadd.f32 %v3831_v48, %v3789_v52  ;;  %v3791_v58 = vadd.f32 %v3790_v53, %v2738_v42 }
 0x454   : > { %v2749_v51 = vsub.s32 6, %v6263_v60 }
 0x455   : > { %5334 = vpow2.f32 %v4022_v55  ;;  %v4024_v59 = vmul.f32 1.442695, %v4007_v56  ;;  %v4013_v45 = vsub.f32 0.0, %v3832_v57  ;;  %v3834_v61 = vadd.f32 %v3833_v46, %v3791_v58 }
 0x456   : > { %v2750_v53 = vrot.slane %v6956_v1, %v2749_v51 }
 0x457   : > { %5336 = vpow2.f32 %v4024_v59  ;;  %v4036_v62 = vmul.f32 1.442695, %v4013_v45  ;;  %v4014_v3 = vsub.f32 0.0, %v3834_v61 }
 0x459   : > { %5338 = vpow2.f32 %v4036_v62  ;;  %v4038_v4 = vmul.f32 1.442695, %v4014_v3 }
 0x45b   : > { %5340 = vpow2.f32 %v4038_v4 }
 0x462   : > { %v5335_v5 = vpop.eup %5334 }
 0x463   : > { %v4048_v21 = vadd.f32 1.0, %v5335_v5 }
 0x464   : > { %v5337_v6 = vpop.eup %5336 }
 0x465   : > { %5342 = vrcp.f32 %v4048_v21  ;;  %v4049_v7 = vadd.f32 1.0, %v5337_v6 }
 0x466   : > { %v5339_v8 = vpop.eup %5338 }
 0x467   : > { %5344 = vrcp.f32 %v4049_v7  ;;  %v4055_v12 = vadd.f32 1.0, %v5339_v8 }
 0x468   : > { %v5341_v9 = vpop.eup %5340 }
 0x469   : > { %5346 = vrcp.f32 %v4055_v12  ;;  %v4056_v2 = vadd.f32 1.0, %v5341_v9 }
 0x46b   : > { %5348 = vrcp.f32 %v4056_v2 }
 0x470   : > { %v3870_v15 = vpop.f32.mrf.mxu0  ;;  %v3913_v16 = vpop.f32.mrf.mxu1 }
 0x471   : > { %v3871_v17 = vadd.f32 %v3870_v15, %v2742_v11 }
 0x472   : > { %v5343_v18 = vpop.eup %5342  ;;  %v3872_v0 = vpop.f32.mrf.mxu0 }
 0x473   : > { %v3915_v19 = vpop.f32.mrf.mxu1  ;;  %4076 = vst [vmem:[%s6965_s26 + $0x10] sm:$0xff] %v5343_v18  ;;  %v3914_v63 = vadd.f32 %v3913_v16, %v3871_v17  ;;  %v3873_v20 = vadd.f32 %v3872_v0, %v2746_v14 }
 0x474   : > { %v5345_v22 = vpop.eup %5344  ;;  %v3874_v24 = vpop.f32.mrf.mxu0 }
 0x475   : > { %v3917_v25 = vpop.f32.mrf.mxu1  ;;  %4077 = vst [vmem:[%s6965_s26 + $0x18] sm:$0xff] %v5345_v22  ;;  %v4008_v27 = vsub.f32 0.0, %v3914_v63  ;;  %v3916_v28 = vadd.f32 %v3915_v19, %v3873_v20  ;;  %v3875_v29 = vadd.f32 %v3874_v24, %v2742_v11 }
 0x476   : > { %v5347_v30 = vpop.eup %5346  ;;  %v3876_v31 = vpop.f32.mrf.mxu0 }
 0x477   : > { %4083 = vst [vmem:[%s6965_s26 + $0x48] sm:$0xff] %v5347_v30  ;;  %v4026_v32 = vmul.f32 1.442695, %v4008_v27  ;;  %v4009_v33 = vsub.f32 0.0, %v3916_v28  ;;  %v3918_v34 = vadd.f32 %v3917_v25, %v3875_v29  ;;  %v3877_v35 = vadd.f32 %v3876_v31, %v2746_v14  ;;  %v3919_v37 = vpop.f32.mrf.mxu1 }
 0x478   : > { %v5349_v36 = vpop.eup %5348 }
 0x479   : > { %4084 = vst [vmem:[%s6965_s26 + $0x50] sm:$0xff] %v5349_v36  ;;  %5350 = vpow2.f32 %v4026_v32  ;;  %v4028_v38 = vmul.f32 1.442695, %v4009_v33  ;;  %v4015_v39 = vsub.f32 0.0, %v3918_v34  ;;  %v3920_v13 = vadd.f32 %v3919_v37, %v3877_v35 }
 0x47b   : > { %5352 = vpow2.f32 %v4028_v38  ;;  %v4040_v54 = vmul.f32 1.442695, %v4015_v39  ;;  %v4016_v42 = vsub.f32 0.0, %v3920_v13 }
 0x47d   : > { %5354 = vpow2.f32 %v4040_v54  ;;  %v4042_v40 = vmul.f32 1.442695, %v4016_v42 }
 0x47f   : > { %5356 = vpow2.f32 %v4042_v40 }
 0x486   : > { %v5351_v41 = vpop.eup %5350 }
 0x487   : > { %v4050_v26 = vadd.f32 1.0, %v5351_v41 }
 0x488   : > { %v5353_v23 = vpop.eup %5352 }
 0x489   : > { %5358 = vrcp.f32 %v4050_v26  ;;  %v4051_v44 = vadd.f32 1.0, %v5353_v23 }
 0x48a   : > { %v5355_v47 = vpop.eup %5354 }
 0x48b   : > { %5360 = vrcp.f32 %v4051_v44  ;;  %v4057_v48 = vadd.f32 1.0, %v5355_v47 }
 0x48c   : > { %v5357_v49 = vpop.eup %5356 }
 0x48d   : > { %5362 = vrcp.f32 %v4057_v48  ;;  %v4058_v50 = vadd.f32 1.0, %v5357_v49 }
 0x48f   : > { %5364 = vrcp.f32 %v4058_v50 }
 0x490   : > { %v4653_v52 = vpop.f32.mrf.mxu1 }
 0x492   : > { %v4654_v55 = vpop.f32.mrf.mxu1 }
 0x493   : > { %v4655_v56 = vadd.f32 %v4654_v55, %v4653_v52 }
 0x494   : > { %v4656_v57 = vpop.f32.mrf.mxu1 }
 0x495   : > { %v3957_v58 = vadd.f32 %v4655_v56, %v2750_v53  ;;  %v3997_v46 = vpop.f32.mrf.mxu0 }
 0x496   : > { %v5359_v59 = vpop.eup %5358  ;;  %v4657_v45 = vpop.f32.mrf.mxu1 }
 0x497   : > { %4078 = vst [vmem:[%s6965_s26 + $0x20] sm:$0xff] %v5359_v59  ;;  %v3998_v61 = vadd.f32 %v3997_v46, %v3957_v58  ;;  %v4658_v62 = vadd.f32 %v4657_v45, %v4656_v57  ;;  %v3999_v3 = vpop.f32.mrf.mxu0 }
 0x498   : > { %v5361_v4 = vpop.eup %5360 }
 0x499   : > { %4079 = vst [vmem:[%s6965_s26 + $0x28] sm:$0xff] %v5361_v4  ;;  %v4010_v60 = vsub.f32 0.0, %v3998_v61  ;;  %v3960_v5 = vadd.f32 %v4658_v62, %v2750_v53  ;;  %v4000_v21 = vpop.f32.mrf.mxu0 }
 0x49a   : > { %v5363_v6 = vpop.eup %5362 }
 0x49b   : > { %4085 = vst [vmem:[%s6965_s26 + $0x58] sm:$0xff] %v5363_v6  ;;  %v4030_v1 = vmul.f32 1.442695, %v4010_v60  ;;  %v4001_v7 = vadd.f32 %v4000_v21, %v3960_v5  ;;  %v4002_v8 = vpop.f32.mrf.mxu0 }
 0x49c   : > { %v5365_v12 = vpop.eup %5364 }
 0x49d   : > { %4086 = vst [vmem:[%s6965_s26 + $0x60] sm:$0xff] %v5365_v12  ;;  %5366 = vpow2.f32 %v4030_v1  ;;  %v4017_v9 = vsub.f32 0.0, %v4001_v7 }
 0x49f   : > { %v4044_v2 = vmul.f32 1.442695, %v4017_v9 }
 0x4a1   : > { %5368 = vpow2.f32 %v4044_v2 }
 0x4aa   : > { %v5367_v43 = vpop.eup %5366 }
 0x4ab   : > { %v4052_v10 = vadd.f32 1.0, %v5367_v43 }
 0x4ad   : > { %5370 = vrcp.f32 %v4052_v10 }
 0x4ae   : > { %v5369_v11 = vpop.eup %5368 }
 0x4af   : > { %v4059_v14 = vadd.f32 1.0, %v5369_v11 }
 0x4b1   : > { %5372 = vrcp.f32 %v4059_v14 }
 0x4ba   : > { %v5371_v15 = vpop.eup %5370 }
 0x4bb   : > { %4080 = vst.msk [vmem:[%s6965_s26 + $0x30] sm:$0xff] %vm1557_vm0, %v5371_v15 }
 0x4be   : > { %v5373_v16 = vpop.eup %5372 }
 0x4bf   : > { %4087 = vst.msk [vmem:[%s6965_s26 + $0x68] sm:$0xff] %vm1557_vm0, %v5373_v16 }
 0x4c0   : > { %5387 = shalt.err (!%p5384_p3)
}
 0x4c1   : > { %s5388_s25 = scalar_lea.hbm %s6996_s21, 1792  ;;  %s5392_s16 = scalar_lea.hbm %s7053_s9, 7168 }
 0x4c2   : > { %p5389_p4 = scmp.ne.s32.totalorder %s6996_s21, %s5388_s25  ;;  %p5393_p9 = scmp.lt.s32.totalorder %s6996_s21, %s7053_s9 }
 0x4c3   : > { %p5394_p10 = scmp.lt.s32.totalorder %s5392_s16, %s5388_s25 }
 0x4c4   : > { %p5390_p7 = pnand %p5389_p4, %p5528_p5 }
 0x4c5   : > { %p5395_p11 = por %p5394_p10, %p5393_p9 }
 0x4c6   : > { %p5391_p8 = pneg %p5390_p7 }
 0x4c8   : > { %p5396_p12 = pnand %p5395_p11, %p5391_p8 }
 0x4ca   : > { %5399 = shalt.err (!%p5396_p12)
}
 0x4cb   : > { %s5438_s13 = smov 896   ;;  %s5439_s23 = smov 56  }
 0x4cc   : > { %4662 = dma.vmem_to_hbm [thread:$0]  (%p5528_p5), %s6998_s27, 1792, %s6996_s21, %s7004_s22, %s5438_s13, %s5438_s13, %s5439_s23  }
 0x4cd PF: > { %p4668_p13 = scmp.ge.s32.totalorder %s5434_s12, 2  ;;  %s4118_s24 = sand.u32 1, %s5422_s30  }
 0x4ce   : > { %s4119_s29 = scalar_lea.sflag [#allocation3], %s4118_s24 }
 0x4cf   : > { %p4665_p0 = pnand %p4668_p13, %p5532_p6 }
 0x4d1   : > { %p4666_p1 = pneg %p4665_p0 }
 0x4d3   : > { %5417 = dma.done.wait (%p4666_p1), %s4119_s29, 1792  }
 0x4d4   : > { %5419 = vsyncadd (%p4666_p1), %s4119_s29, 4294965504  ;;  %p19_p2 = scmp.ge.s32.totalorder %s5515_s15, 6   ;;  %s7056_s30 = smov %s5426_s10 }
 0x4d5   : > { %s7057_s10 = smov %s5430_s11  ;;  %s7058_s11 = smov %s5526_s18 }
 0x4d6   : > { %s7059_s12 = smov %s5515_s15  ;;  %21 = sbr.rel (!%p19_p2) target bundleno = 3 (0x3), region = 91 }
 0x4db   :  { %4124 = vsyncpa [#allocation3], 1 }
 0x4dc   :  { %4126 = vsyncpa [#allocation3 + $0x1], 1 }

</bundles_post_ra>
